<compile_context>
chip_gen: v5e
topology: v5e:2x2
jax: 0.10.0
libtpu: 0.0.40
codegen_flags: <defaults>
</compile_context>

<pallas_src>
import jax
import jax.numpy as jnp
from jax.experimental import pallas as pl
from jax.experimental.pallas import tpu as pltpu


def _cdiv(a: int, b: int) -> int:
    return -(-a // b)


def _round_up(a: int, b: int) -> int:
    return _cdiv(a, b) * b


def _make_kernel(q_rows: int):
    """q_rows = packed rows feeding one 128-wide output row (= 128 // k)."""

    def kernel(v_ref, x_ref, w_ref, s_ref, m_ref, b_ref, o_ref):
        # v_ref, x_ref : (tm, kD)       packed activations, native dtype
        # w_ref        : (kD, kD)       block-diagonal kron(I_k, W), resident
        # s_ref        : (kD, 128) f32  group-sum + lane-broadcast matrix, resident
        # m_ref        : (Q, 128)  f32  row-selection mask, resident
        # b_ref        : (1, 1)    f32  bias (SMEM)
        # o_ref        : (tm*k/128, 128) f32, lane-dense, row-major sample order
        v = v_ref[...]
        x = x_ref[...]

        # sp_sigmoid(v) = 2*sigmoid(v) - 1 == tanh(v/2): a single EUP op, in the
        # input dtype (bf16 inputs -> bf16 EUP on v6e/v7x; f32 stays f32).
        sp_v = jnp.tanh(0.5 * v)
        gate = jax.nn.sigmoid(x)

        # (tm, kD) @ (kD, kD) on the MXU, f32 accumulation.
        vw = jnp.dot(sp_v.astype(w_ref.dtype), w_ref[...],
                     preferred_element_type=jnp.float32)
        prod = vw * gate.astype(jnp.float32)                       # (tm, kD) f32

        # Per-sample reduction broadcast across its k lane slots:
        #   t[p, c] = sum_d prod[p, (c % k)*D + d]          (f32 MXU matmul)
        t = jnp.dot(prod, s_ref[...], preferred_element_type=jnp.float32)

        # Select row q = c // k inside each group of Q packed rows so the value
        # for tile-local sample r*128 + c lands at [r, c]:
        # free sublane reshape + 0/1 mask + sublane sum (VPU/XLU, no relayout).
        rows_out = t.shape[0] // q_rows
        t3 = t.reshape(rows_out, q_rows, 128)
        dense = jnp.sum(t3 * m_ref[...][None, :, :], axis=1)       # (rows_out, 128)

        o_ref[...] = jax.nn.sigmoid(dense + b_ref[0, 0])

    return kernel


def inner_product_attr_decoder(v, x, W, b, *, tile_m=4096, mxu_dtype=jnp.bfloat16):
    """Pallas TPU implementation of InnerProductAttrDecoder.forward.

    v, x: [N, D]; W: [D, D]; b: scalar or shape-(1,). Returns [N] float32.

    tile_m    : packed rows per grid step (rounded/clamped to legal sizes).
    mxu_dtype : dtype of the first matmul's operands (sp_sigmoid(v) and the
                learned W) on the MXU. bf16 (default) halves MXU work and is
                plenty for this inference decoder, but it quantizes W: pass
                jnp.float32 for exact f32 parity with the PyTorch module.
                Activations v/x are always read in their own dtype (no extra
                cast pass); pass bf16 activations to also halve input DMA and
                use bf16 EUP on v6e/v7x.
    """
    N, D = v.shape
    assert x.shape == (N, D) and W.shape == (D, D)
    mxu_dtype = jnp.dtype(mxu_dtype)
    in_bytes = jnp.dtype(v.dtype).itemsize

    # Pack k samples per row when D divides 128 so all 128 lanes carry data.
    # TODO(synk): for D that neither divides 128 nor is a multiple of it, the
    # unpacked fallback leaves lanes idle; padding D up to the next divisor of
    # 128 would recover them at the cost of one wrapper pad pass.
    if D < 128 and 128 % D == 0 and D >= 8:
        k = 128 // D
    else:
        k = 1
    kD = k * D
    Q = 128 // k                       # packed rows feeding one output row
    g = max(8, 1024 // k)              # tile granularity: keeps in/out blocks legal

    R = _cdiv(N, k)                    # packed rows of real data
    tm = _round_up(min(int(tile_m), _round_up(R, g)), g)
    n_steps = _cdiv(R, tm)

    # Keep v7x's two TensorCores balanced (free on v5e/v6e): prefer an even,
    # equal-ish step count when there is enough work to split.
    if n_steps == 1 and R > 2 * g:
        tm = _round_up(_cdiv(R, 2), g)
    elif n_steps % 2 == 1 and n_steps < 8 and R > n_steps * g:
        tm = _round_up(_cdiv(R, n_steps + 1), g)
    n_steps = _cdiv(R, tm)

    # VMEM budget: double buffering, 128-lane padding, and the f32 intermediates
    # (sp_v, gate, vw, prod, t, masked product, ...) the kernel body keeps live.
    lanes = _round_up(kD, 128)

    def vmem_bytes(t):
        out_rows = t * k // 128
        return (2 * 2 * t * lanes * in_bytes                 # v, x pipeline buffers
                + 8 * t * lanes * 4                          # f32 intermediates
                + 2 * lanes * lanes * mxu_dtype.itemsize     # block-diag W
                + 2 * lanes * 128 * 4                        # reduce matrix (f32)
                + 2 * _round_up(Q, 8) * 128 * 4              # selection mask (f32)
                + 2 * _round_up(out_rows, 8) * 128 * 4)      # output pipeline buffers

    try:
        vmem_cap = int(pltpu.get_tpu_info().vmem_capacity_bytes)
    except Exception:
        vmem_cap = 64 << 20                                  # v7x-safe fallback
    budget = (vmem_cap * 3) // 4
    while vmem_bytes(tm) > budget and tm > g:
        tm = max(g, _round_up(tm // 2, g))
    n_steps = _cdiv(R, tm)

    # Rows handed to the kernel.  Large-N common case: a free row-major reshape
    # of the original arrays (no cast / pad pass).  Only tiny inputs (R < tm)
    # or N % k != 0 need zero padding; ragged last tiles are handled by Pallas.
    R_in = max(R, tm)
    N_in = R_in * k
    if N_in != N:
        pad = ((0, N_in - N), (0, 0))
        v = jnp.pad(v, pad)
        x = jnp.pad(x, pad)
    v_p = v.reshape(R_in, kD)
    x_p = x.reshape(R_in, kD)

    # Tiny resident constants.
    W_blk = jnp.kron(jnp.eye(k, dtype=jnp.float32),
                     W.astype(jnp.float32)).astype(mxu_dtype)        # (kD, kD)
    l_idx = jnp.arange(kD)[:, None]
    c_idx = jnp.arange(128)[None, :]
    S_red = ((l_idx // D) == (c_idx % k)).astype(jnp.float32)        # (kD, 128)
    q_idx = jnp.arange(Q)[:, None]
    Mask = (q_idx == (c_idx // k)).astype(jnp.float32)               # (Q, 128)
    b2 = jnp.asarray(b, jnp.float32).reshape(-1)[:1].reshape(1, 1)   # (1, 1)

    out_block_rows = tm * k // 128
    out_rows = n_steps * out_block_rows

    cost = pl.CostEstimate(
        flops=int(2 * n_steps * tm * kD * (kD + 128)),
        transcendentals=int(n_steps * tm * (2 * kD + k)),
        bytes_accessed=int(2 * R_in * kD * in_bytes + out_rows * 128 * 4
                           + kD * kD * mxu_dtype.itemsize + kD * 128 * 4),
    )

    out = pl.pallas_call(
        _make_kernel(Q),
        out_shape=jax.ShapeDtypeStruct((out_rows, 128), jnp.float32),
        grid_spec=pltpu.PrefetchScalarGridSpec(
            num_scalar_prefetch=0,
            grid=(n_steps,),
            in_specs=[
                pl.BlockSpec((tm, kD), lambda i: (i, 0)),             # v tile
                pl.BlockSpec((tm, kD), lambda i: (i, 0)),             # x tile
                pl.BlockSpec((kD, kD), lambda i: (0, 0)),             # W (resident)
                pl.BlockSpec((kD, 128), lambda i: (0, 0)),            # reduce matrix
                pl.BlockSpec((Q, 128), lambda i: (0, 0)),             # select mask
                pl.BlockSpec(memory_space=pltpu.MemorySpace.SMEM),    # bias
            ],
            out_specs=pl.BlockSpec((out_block_rows, 128), lambda i: (i, 0)),
        ),
        compiler_params=pltpu.CompilerParams(
            dimension_semantics=("parallel",),
            vmem_limit_bytes=int(min((vmem_cap * 7) // 8,
                                     max(vmem_bytes(tm) + (8 << 20), 32 << 20))),
        ),
        cost_estimate=cost,
    )(v_p, x_p, W_blk, S_red, Mask, b2)

    # (out_rows, 128) flattens row-major straight back to sample order.
    return out.reshape(-1)[:N]


def _reference(v, x, W, b):
    sp_v = 2.0 * jax.nn.sigmoid(v) - 1.0
    return jax.nn.sigmoid(jnp.sum((sp_v @ W) * jax.nn.sigmoid(x), axis=1) + b)


if __name__ == "__main__":
    key = jax.random.PRNGKey(0)
    N, D = 8, 32                     # batch of 8 samples, dim_interest = 32

    kv, kx = jax.random.split(key)
    v = jax.random.normal(kv, (N, D), dtype=jnp.float32)
    x = jax.random.normal(kx, (N, D), dtype=jnp.float32)

    # Parameters exactly as in __init__: W = eye(dim_interest), b = [0.0]
    W = jnp.eye(D, dtype=jnp.float32)
    b = jnp.zeros((1,), jnp.float32)

    ref = _reference(v, x, W, b[0])

    # Default path: bf16 MXU operands (inference-friendly).
    out = jax.block_until_ready(inner_product_attr_decoder(v, x, W, b))
    assert out.shape == (N,)
    assert jnp.allclose(out, ref, atol=3e-2, rtol=3e-2), (out, ref)

    # Exact-parity path: f32 everywhere.
    out_f32 = jax.block_until_ready(
        inner_product_attr_decoder(v, x, W, b, mxu_dtype=jnp.float32))
    assert jnp.allclose(out_f32, ref, atol=2e-4, rtol=2e-4), (out_f32, ref)

    print("KERNEL_OK")
</pallas_src>

<mosaic_0001>
module attributes {stable_mosaic.version = 11 : i64} {
  func.func @kernel(%arg0: i32, %arg1: memref<256x128xf32, #tpu.memory_space<vmem>>, %arg2: memref<256x128xf32, #tpu.memory_space<vmem>>, %arg3: memref<128x128xbf16, #tpu.memory_space<vmem>>, %arg4: memref<128x128xf32, #tpu.memory_space<vmem>>, %arg5: memref<32x128xf32, #tpu.memory_space<vmem>>, %arg6: memref<1x1xf32, #tpu.memory_space<smem>>, %arg7: memref<8x128xf32, #tpu.memory_space<vmem>>) attributes {dimension_semantics = [#tpu.dimension_semantics<parallel>], iteration_bounds = array<i64: 1>, scalar_prefetch = 0 : i64, scratch_operands = 0 : i64, tpu.core_type = #tpu.core_type<tc>, window_params = [{transform_indices = @transform_0, window_bounds = array<i64: 256, 128>}, {transform_indices = @transform_1, window_bounds = array<i64: 256, 128>}, {pipeline_mode = #tpu.pipeline_mode<synchronous>, transform_indices = @transform_2, window_bounds = array<i64: 128, 128>}, {pipeline_mode = #tpu.pipeline_mode<synchronous>, transform_indices = @transform_3, window_bounds = array<i64: 128, 128>}, {pipeline_mode = #tpu.pipeline_mode<synchronous>, transform_indices = @transform_4, window_bounds = array<i64: 32, 128>}, {transform_indices = @transform_5, window_bounds = array<i64: 1, 1>}, {transform_indices = @transform_6, window_bounds = array<i64: 8, 128>}]} {
    %c0 = arith.constant 0 : index
    %c0_0 = arith.constant 0 : index
    %0 = vector.load %arg1[%c0, %c0_0] : memref<256x128xf32, #tpu.memory_space<vmem>>, vector<256x128xf32>
    %c0_1 = arith.constant 0 : index
    %c0_2 = arith.constant 0 : index
    %1 = vector.load %arg2[%c0_1, %c0_2] : memref<256x128xf32, #tpu.memory_space<vmem>>, vector<256x128xf32>
    %cst = arith.constant 5.000000e-01 : f32
    %2 = vector.broadcast %cst : f32 to vector<256x128xf32>
    %3 = arith.mulf %2, %0 : vector<256x128xf32>
    %4 = math.tanh %3 : vector<256x128xf32>
    %5 = arith.negf %1 : vector<256x128xf32>
    %6 = math.exp %5 : vector<256x128xf32>
    %cst_3 = arith.constant 1.000000e+00 : f32
    %7 = vector.broadcast %cst_3 : f32 to vector<256x128xf32>
    %8 = arith.addf %7, %6 : vector<256x128xf32>
    %9 = arith.divf %7, %8 : vector<256x128xf32>
    %10 = arith.truncf %4 : vector<256x128xf32> to vector<256x128xbf16>
    %c0_4 = arith.constant 0 : index
    %c0_5 = arith.constant 0 : index
    %11 = vector.load %arg3[%c0_4, %c0_5] : memref<128x128xbf16, #tpu.memory_space<vmem>>, vector<128x128xbf16>
    %cst_6 = arith.constant dense<0.000000e+00> : vector<256x128xf32>
    %12 = tpu.matmul %10, %11, %cst_6 {dimension_numbers = #tpu.dot_dimension_numbers<[1], [0], [0], [1], [0, 0, 1, 1], [], []>} : vector<256x128xbf16>, vector<128x128xbf16>, vector<256x128xf32> -> vector<256x128xf32>
    %13 = arith.mulf %12, %9 : vector<256x128xf32>
    %c0_7 = arith.constant 0 : index
    %c0_8 = arith.constant 0 : index
    %14 = vector.load %arg4[%c0_7, %c0_8] : memref<128x128xf32, #tpu.memory_space<vmem>>, vector<128x128xf32>
    %cst_9 = arith.constant dense<0.000000e+00> : vector<256x128xf32>
    %15 = tpu.matmul %13, %14, %cst_9 {dimension_numbers = #tpu.dot_dimension_numbers<[1], [0], [0], [1], [0, 0, 1, 1], [], []>} : vector<256x128xf32>, vector<128x128xf32>, vector<256x128xf32> -> vector<256x128xf32>
    %16 = vector.shape_cast %15 : vector<256x128xf32> to vector<8x32x128xf32>
    %c0_10 = arith.constant 0 : index
    %c0_11 = arith.constant 0 : index
    %17 = vector.load %arg5[%c0_10, %c0_11] : memref<32x128xf32, #tpu.memory_space<vmem>>, vector<32x128xf32>
    %18 = vector.shape_cast %17 : vector<32x128xf32> to vector<1x32x128xf32>
    %19 = vector.broadcast %18 : vector<1x32x128xf32> to vector<8x32x128xf32>
    %20 = arith.mulf %16, %19 : vector<8x32x128xf32>
    %cst_12 = arith.constant dense<0.000000e+00> : vector<8x128xf32>
    %21 = vector.multi_reduction <add>, %20, %cst_12 [1] : vector<8x32x128xf32> to vector<8x128xf32>
    %c0_13 = arith.constant 0 : index
    %c0_14 = arith.constant 0 : index
    %22 = memref.load %arg6[%c0_13, %c0_14] : memref<1x1xf32, #tpu.memory_space<smem>>
    %23 = vector.broadcast %22 : f32 to vector<8x128xf32>
    %24 = arith.addf %21, %23 : vector<8x128xf32>
    %25 = arith.negf %24 : vector<8x128xf32>
    %26 = math.exp %25 : vector<8x128xf32>
    %cst_15 = arith.constant 1.000000e+00 : f32
    %27 = vector.broadcast %cst_15 : f32 to vector<8x128xf32>
    %28 = arith.addf %27, %26 : vector<8x128xf32>
    %29 = arith.divf %27, %28 : vector<8x128xf32>
    %c0_16 = arith.constant 0 : index
    %c0_17 = arith.constant 0 : index
    %30 = vector.load %arg7[%c0_16, %c0_17] : memref<8x128xf32, #tpu.memory_space<vmem>>, vector<8x128xf32>
    tpu.vector_store %arg7[%c0_16, %c0_17], %29 {strides = array<i32>} : memref<8x128xf32, #tpu.memory_space<vmem>>, vector<8x128xf32>,
    return
  }
  func.func @transform_0(%arg0: i32) -> (i32, i32) {
    %c0_i32 = arith.constant 0 : i32
    %c0_i32_0 = arith.constant 0 : i32
    return %arg0, %c0_i32 : i32, i32
  }
  func.func @transform_1(%arg0: i32) -> (i32, i32) {
    %c0_i32 = arith.constant 0 : i32
    %c0_i32_0 = arith.constant 0 : i32
    return %arg0, %c0_i32 : i32, i32
  }
  func.func @transform_2(%arg0: i32) -> (i32, i32) {
    %c0_i32 = arith.constant 0 : i32
    %c0_i32_0 = arith.constant 0 : i32
    %c0_i32_1 = arith.constant 0 : i32
    return %c0_i32, %c0_i32_0 : i32, i32
  }
  func.func @transform_3(%arg0: i32) -> (i32, i32) {
    %c0_i32 = arith.constant 0 : i32
    %c0_i32_0 = arith.constant 0 : i32
    %c0_i32_1 = arith.constant 0 : i32
    return %c0_i32, %c0_i32_0 : i32, i32
  }
  func.func @transform_4(%arg0: i32) -> (i32, i32) {
    %c0_i32 = arith.constant 0 : i32
    %c0_i32_0 = arith.constant 0 : i32
    %c0_i32_1 = arith.constant 0 : i32
    return %c0_i32, %c0_i32_0 : i32, i32
  }
  func.func @transform_5(%arg0: i32) -> (i32, i32) {
    %c0_i32 = arith.constant 0 : i32
    %c0_i32_0 = arith.constant 0 : i32
    %c0_i32_1 = arith.constant 0 : i32
    return %c0_i32, %c0_i32_0 : i32, i32
  }
  func.func @transform_6(%arg0: i32) -> (i32, i32) {
    %c0_i32 = arith.constant 0 : i32
    %c0_i32_0 = arith.constant 0 : i32
    return %arg0, %c0_i32 : i32, i32
  }
}

</mosaic_0001>

<bundles_post_ra>
// kernel: tpu_custom_call.1
= control target key start
LH: loop header
LB: loop body
LE: loop exit
PB: predicated region body
PF: predicated region fallthrough
CT: control target
= control target key end

     0   :  { %12 = vsyncpa [#allocation4], 0  ;;  %s3104_s0 = inlined_call_operand.hbm [shape: f32[256,128], index: 0, kind: input, shape index: {}]   ;;  %s3105_s1 = inlined_call_operand.hbm [shape: f32[256,128], index: 1, kind: input, shape index: {}]   ;;  %s3106_s2 = inlined_call_operand.hbm [shape: bf16[128,128], index: 2, kind: input, shape index: {}]   ;;  %s3107_s3 = inlined_call_operand.hbm [shape: f32[128,128], index: 3, kind: input, shape index: {}]   ;;  %s3108_s4 = inlined_call_operand.hbm [shape: f32[32,128], index: 4, kind: input, shape index: {}]   ;;  %s3109_s5 = inlined_call_operand.<no memory space> [shape: f32[1,1], index: 5, kind: input, shape index: {}]   ;;  %s3110_s6 = inlined_call_operand.hbm [shape: f32[8,128], index: 6, kind: output, shape index: {}]  }
   0x1   :  { %13 = vsyncpa [#allocation7], 0 }
   0x2   :  { %14 = vsyncpa [#allocation10], 0 }
   0x3   :  { %15 = vsyncpa [#allocation5], 0  ;;  %s33_s23 = sshll.u32 %s3105_s1, 4  ;;  %s1972_s24 = smov [#allocation6]   ;;  %s34_s23 = int_to_ptr.hbm [resolvable:$true] %s33_s23 }
   0x4   :  { %s35_s25 = sshll.u32 %s1972_s24, 4  ;;  %s59_s28 = sshll.u32 %s3107_s3, 4  ;;  %s36_s25 = int_to_ptr.vmem [resolvable:$true] %s35_s25  ;;  %s60_s28 = int_to_ptr.hbm [resolvable:$true] %s59_s28 }
   0x5   :  { %s1973_s29 = smov 128   ;;  %s1974_s30 = smov 8  }
   0x6   :  { %41 = dma.hbm_to_vmem [thread:$0]  %s34_s23, 4096, %s36_s25, [#allocation7], %s1973_s29, %s1973_s29, %s1974_s30  }
   0x7   :  { %s1975_s7 = smov [#allocation9]   ;;  %s20_s1 = sshll.u32 %s3104_s0, 4  ;;  %s21_s1 = int_to_ptr.hbm [resolvable:$true] %s20_s1 }
   0x8   :  { %s61_s8 = sshll.u32 %s1975_s7, 4  ;;  %s46_s12 = sshll.u32 %s3106_s2, 4  ;;  %s62_s8 = int_to_ptr.vmem [resolvable:$true] %s61_s8  ;;  %s47_s12 = int_to_ptr.hbm [resolvable:$true] %s46_s12 }
   0x9   :  { %67 = dma.hbm_to_vmem [thread:$0]  %s60_s28, 2048, %s62_s8, [#allocation10], %s1973_s29, %s1973_s29, %s1974_s30  }
   0xa   :  { %s1976_s13 = smov [#allocation3]   ;;  %s1977_s15 = smov [#allocation8]  }
   0xb   :  { %s22_s14 = sshll.u32 %s1976_s13, 4  ;;  %s48_s0 = sshll.u32 %s1977_s15, 4  ;;  %s23_s14 = int_to_ptr.vmem [resolvable:$true] %s22_s14  ;;  %s49_s0 = int_to_ptr.vmem [resolvable:$true] %s48_s0 }
   0xc   :  { %28 = dma.hbm_to_vmem [thread:$0]  %s21_s1, 4096, %s23_s14, [#allocation4], %s1973_s29, %s1973_s29, %s1974_s30  }
   0xd   :  { %s1978_s16 = smov 64   ;;  %s1979_s17 = smov 4  }
   0xe   :  { %54 = dma.hbm_to_vmem [thread:$0]  %s47_s12, 1024, %s49_s0, [#allocation7], %s1978_s16, %s1978_s16, %s1979_s17  }
   0xf   :  { %s72_s20 = sshll.u32 %s3108_s4, 4  ;;  %s1980_s2 = smov [#allocation11]   ;;  %s73_s20 = int_to_ptr.hbm [resolvable:$true] %s72_s20 }
  0x10   :  { %s74_s21 = sshll.u32 %s1980_s2, 4  ;;  %s75_s21 = int_to_ptr.vmem [resolvable:$true] %s74_s21 }
  0x11   :  { %80 = dma.hbm_to_vmem [thread:$0]  %s73_s20, 512, %s75_s21, [#allocation10], %s1973_s29, %s1973_s29, %s1974_s30  }
  0x12   :  { %1964 = dma.done.wait [#allocation4], 4096  }
  0x13   :  { %1965 = vsyncadd [#allocation4], 4294963200 }
  0x14   :  { %1966 = dma.done.wait [#allocation7], 5120  }
  0x15   :  { %1967 = vsyncadd [#allocation7], 4294962176 }
  0x16   :  { %1968 = dma.done.wait [#allocation10], 2560  }
  0x17   :  { %1969 = vsyncadd [#allocation10], 4294964736  ;;  %v1561_v0 = vld [vmem:[#allocation8 + $0x38] sm:$0xff]  ;;  %v1560_v1 = vld [vmem:[#allocation8 + $0x30] sm:$0xff]  ;;  %s1470_s26 = sshll.u32 %s3110_s6, 4  ;;  %s1471_s26 = int_to_ptr.hbm [resolvable:$true] %s1470_s26 }
  0x18   :  { %919 = vmatpush.bf16.msra.mxu0 %v1561_v0  ;;  %1562 = vmatpush.bf16.msra.mxu2 %v1561_v0  ;;  %v1559_v2 = vld [vmem:[#allocation8 + $0x28] sm:$0xff]  ;;  %v1558_v3 = vld [vmem:[#allocation8 + $0x20] sm:$0xff]  ;;  %v1557_v9 = vld [vmem:[#allocation8 + $0x18] sm:$0xff] }
  0x19   :  { %v103_v4 = vld [vmem:[#allocation3] sm:$0xff]  ;;  %v104_v5 = vld [vmem:[#allocation3 + $0x8] sm:$0xff]  ;;  %v1556_v13 = vld [vmem:[#allocation8 + $0x10] sm:$0xff] }
  0x1a   :  { %v119_v6 = vld [vmem:[#allocation3 + $0x80] sm:$0xff]  ;;  %v167_v7 = vmul.f32 0.5, %v103_v4  ;;  %v120_v8 = vld [vmem:[#allocation3 + $0x88] sm:$0xff]  ;;  %v168_v10 = vmul.f32 0.5, %v104_v5  ;;  %v105_v20 = vld [vmem:[#allocation3 + $0x10] sm:$0xff] }
  0x1b   :  { %v183_v11 = vmul.f32 0.5, %v119_v6  ;;  %v184_v12 = vmul.f32 0.5, %v120_v8  ;;  %v1555_v14 = vld [vmem:[#allocation8 + $0x8] sm:$0xff]  ;;  %v1554_v19 = vld [vmem:[#allocation8] sm:$0xff]  ;;  %v106_v21 = vld [vmem:[#allocation3 + $0x18] sm:$0xff]  ;;  %v169_v25 = vmul.f32 0.5, %v105_v20 }
  0x1c   :  { %920 = vmatpush.bf16.msra.mxu0 %v1560_v1  ;;  %1563 = vmatpush.bf16.msra.mxu2 %v1560_v1  ;;  %1596 = vtanh.f32 %v167_v7  ;;  %v121_v22 = vld [vmem:[#allocation3 + $0x90] sm:$0xff]  ;;  %v122_v26 = vld [vmem:[#allocation3 + $0x98] sm:$0xff]  ;;  %v170_v27 = vmul.f32 0.5, %v106_v21  ;;  %v107_v34 = vld [vmem:[#allocation3 + $0x20] sm:$0xff] }
  0x1d   :  { %1598 = vtanh.f32 %v168_v10  ;;  %v185_v28 = vmul.f32 0.5, %v121_v22  ;;  %v186_v29 = vmul.f32 0.5, %v122_v26  ;;  %v108_v35 = vld [vmem:[#allocation3 + $0x28] sm:$0xff]  ;;  %v123_v36 = vld [vmem:[#allocation3 + $0xa0] sm:$0xff]  ;;  %v171_v39 = vmul.f32 0.5, %v107_v34  ;;  %v109_v48 = vld [vmem:[#allocation3 + $0x30] sm:$0xff] }
  0x1e   :  { %1600 = vtanh.f32 %v183_v11  ;;  %v124_v40 = vld [vmem:[#allocation3 + $0xa8] sm:$0xff]  ;;  %v172_v41 = vmul.f32 0.5, %v108_v35  ;;  %v187_v42 = vmul.f32 0.5, %v123_v36  ;;  %v110_v49 = vld [vmem:[#allocation3 + $0x38] sm:$0xff]  ;;  %v125_v50 = vld [vmem:[#allocation3 + $0xb0] sm:$0xff]  ;;  %v173_v53 = vmul.f32 0.5, %v109_v48 }
  0x1f   :  { %1602 = vtanh.f32 %v184_v12  ;;  %v188_v43 = vmul.f32 0.5, %v124_v40  ;;  %v126_v54 = vld [vmem:[#allocation3 + $0xb8] sm:$0xff]  ;;  %v174_v55 = vmul.f32 0.5, %v110_v49  ;;  %v189_v56 = vmul.f32 0.5, %v125_v50  ;;  %v111_v62 = vld [vmem:[#allocation3 + $0x40] sm:$0xff]  ;;  %v112_v63 = vld [vmem:[#allocation3 + $0x48] sm:$0xff] }
  0x20   :  { %921 = vmatpush.bf16.msra.mxu0 %v1559_v2  ;;  %1564 = vmatpush.bf16.msra.mxu2 %v1559_v2  ;;  %1604 = vtanh.f32 %v169_v25  ;;  %v190_v57 = vmul.f32 0.5, %v126_v54  ;;  %v127_v0 = vld [vmem:[#allocation3 + $0xc0] sm:$0xff]  ;;  %v128_v4 = vld [vmem:[#allocation3 + $0xc8] sm:$0xff]  ;;  %v176_v5 = vmul.f32 0.5, %v112_v63  ;;  %v113_v12 = vld [vmem:[#allocation3 + $0x50] sm:$0xff] }
  0x21   :  { %1606 = vtanh.f32 %v170_v27  ;;  %v191_v6 = vmul.f32 0.5, %v127_v0  ;;  %v192_v7 = vmul.f32 0.5, %v128_v4  ;;  %v1055_v22 = vld [vmem:[#allocation9 + $0x78] sm:$0xff]  ;;  %v1052_v25 = vld [vmem:[#allocation9 + $0x60] sm:$0xff]  ;;  %v136_v36 = vld [vmem:[#allocation6 + $0x8] sm:$0xff] }
  0x22   :  { %v1597_v15 = vpop.eup %1596  ;;  %1608 = vtanh.f32 %v185_v28  ;;  %1056 = vmatpush.msra.mxu1 %v1055_v22  ;;  %1570 = vmatpush.msra.mxu3 %v1055_v22  ;;  %v135_v26 = vld [vmem:[#allocation6] sm:$0xff]  ;;  %v1051_v28 = vld [vmem:[#allocation9 + $0x58] sm:$0xff]  ;;  %v1045_v54 = vld [vmem:[#allocation9 + $0x28] sm:$0xff] }
  0x23   :  { %v1599_v16 = vpop.eup %1598  ;;  %1610 = vtanh.f32 %v186_v29  ;;  %v115_v35 = vld [vmem:[#allocation3 + $0x60] sm:$0xff]  ;;  %v1047_v50 = vld [vmem:[#allocation9 + $0x38] sm:$0xff]  ;;  %v137_v0 = vld [vmem:[#allocation6 + $0x10] sm:$0xff] }
  0x24   :  { %922 = vmatpush.bf16.msra.mxu0 %v1558_v3  ;;  %1565 = vmatpush.bf16.msra.mxu2 %v1558_v3  ;;  %v1601_v17 = vpop.eup %1600  ;;  %v839_v23 = vpack.c.bf16 %v1599_v16, %v1597_v15  ;;  %1612 = vtanh.f32 %v171_v39  ;;  %v175_v3 = vmul.f32 0.5, %v111_v62  ;;  %v131_v40 = vld [vmem:[#allocation3 + $0xe0] sm:$0xff]  ;;  %v1043_v62 = vld [vmem:[#allocation9 + $0x18] sm:$0xff] }
  0x25   :  { %v1603_v18 = vpop.eup %1602  ;;  %1614 = vtanh.f32 %v172_v41  ;;  %v1483_v41 = vmul.f32 -1.442695, %v136_v36  ;;  %v195_v48 = vmul.f32 0.5, %v131_v40  ;;  %v1040_v22 = vld [vmem:[#allocation9] sm:$0xff] }
  0x26   :  { %v847_v24 = vpack.c.bf16 %v1603_v18, %v1601_v17  ;;  %v1605_v30 = vpop.eup %1604  ;;  %1616 = vtanh.f32 %v187_v42  ;;  %v177_v17 = vmul.f32 0.5, %v113_v12  ;;  %v130_v18 = vld [vmem:[#allocation3 + $0xd8] sm:$0xff]  ;;  %v133_v12 = vld [vmem:[#allocation3 + $0xf0] sm:$0xff] }
  0x27   :  { %v1607_v31 = vpop.eup %1606  ;;  %1618 = vtanh.f32 %v188_v43  ;;  %v194_v21 = vmul.f32 0.5, %v130_v18 }
  0x28   :  { %923 = vmatpush.bf16.msra.mxu0 %v1557_v9  ;;  %1566 = vmatpush.bf16.msra.mxu2 %v1557_v9  ;;  %v1609_v32 = vpop.eup %1608  ;;  %v840_v37 = vpack.c.bf16 %v1607_v31, %v1605_v30  ;;  %1620 = vtanh.f32 %v173_v53  ;;  %v151_v30 = vld [vmem:[#allocation6 + $0x80] sm:$0xff] }
  0x29   :  { %v1611_v33 = vpop.eup %1610  ;;  %1622 = vtanh.f32 %v174_v55  ;;  %v1498_v39 = vmul.f32 -1.442695, %v151_v30  ;;  %v152_v55 = vld [vmem:[#allocation6 + $0x88] sm:$0xff] }
  0x2a   :  { %v848_v38 = vpack.c.bf16 %v1611_v33, %v1609_v32  ;;  %v1613_v44 = vpop.eup %1612  ;;  %1624 = vtanh.f32 %v189_v56  ;;  %v1050_v32 = vld [vmem:[#allocation9 + $0x50] sm:$0xff]  ;;  %v1482_v33 = vmul.f32 -1.442695, %v135_v26  ;;  %v1499_v63 = vmul.f32 -1.442695, %v152_v55 }
  0x2b   :  { %v1615_v45 = vpop.eup %1614  ;;  %1626 = vtanh.f32 %v190_v57 }
  0x2c   :  { %924 = vmatpush.bf16.msra.mxu0 %v1556_v13  ;;  %1567 = vmatpush.bf16.msra.mxu2 %v1556_v13  ;;  %v1617_v46 = vpop.eup %1616  ;;  %v841_v51 = vpack.c.bf16 %v1615_v45, %v1613_v44  ;;  %1628 = vtanh.f32 %v175_v3  ;;  %v114_v13 = vld [vmem:[#allocation3 + $0x58] sm:$0xff]  ;;  %v179_v44 = vmul.f32 0.5, %v115_v35  ;;  %v132_v45 = vld [vmem:[#allocation3 + $0xe8] sm:$0xff] }
  0x2d   :  { %v1619_v47 = vpop.eup %1618  ;;  %1630 = vtanh.f32 %v176_v5  ;;  %v196_v49 = vmul.f32 0.5, %v132_v45  ;;  %v1042_v5 = vld [vmem:[#allocation9 + $0x10] sm:$0xff] }
  0x2e   :  { %v849_v52 = vpack.c.bf16 %v1619_v47, %v1617_v46  ;;  %v1621_v58 = vpop.eup %1620  ;;  %1632 = vtanh.f32 %v191_v6  ;;  %v1048_v46 = vld [vmem:[#allocation9 + $0x40] sm:$0xff] }
  0x2f   :  { %v1623_v59 = vpop.eup %1622  ;;  %1634 = vtanh.f32 %v192_v7  ;;  %v153_v7 = vld [vmem:[#allocation6 + $0x90] sm:$0xff] }
  0x30   :  { %925 = vmatpush.bf16.msra.mxu0 %v1555_v14  ;;  %1568 = vmatpush.bf16.msra.mxu2 %v1555_v14  ;;  %v1625_v60 = vpop.eup %1624  ;;  %v842_v1 = vpack.c.bf16 %v1623_v59, %v1621_v58  ;;  %v129_v14 = vld [vmem:[#allocation3 + $0xd0] sm:$0xff]  ;;  %1636 = vtanh.f32 %v177_v17  ;;  %v1044_v58 = vld [vmem:[#allocation9 + $0x20] sm:$0xff]  ;;  %v1041_v17 = vld [vmem:[#allocation9 + $0x8] sm:$0xff] }
  0x31   :  { %v1627_v61 = vpop.eup %1626  ;;  %v193_v20 = vmul.f32 0.5, %v129_v14  ;;  %v1500_v14 = vmul.f32 -1.442695, %v153_v7 }
  0x32   :  { %v850_v2 = vpack.c.bf16 %v1627_v61, %v1625_v60  ;;  %v1629_v8 = vpop.eup %1628 }
  0x33   :  { %v1631_v9 = vpop.eup %1630 }
  0x34   :  { %926 = vmatpush.bf16.msra.mxu0 %v1554_v19  ;;  %1569 = vmatpush.bf16.msra.mxu2 %v1554_v19  ;;  %v1633_v10 = vpop.eup %1632  ;;  %v843_v15 = vpack.c.bf16 %v1631_v9, %v1629_v8  ;;  %v178_v19 = vmul.f32 0.5, %v114_v13  ;;  %v1484_v9 = vmul.f32 -1.442695, %v137_v0  ;;  %v134_v13 = vld [vmem:[#allocation3 + $0xf8] sm:$0xff] }
  0x35   :  { %v1635_v11 = vpop.eup %1634 }
  0x36   :  { %v851_v16 = vpack.c.bf16 %v1635_v11, %v1633_v10  ;;  %1638 = vtanh.f32 %v178_v19  ;;  %v1637_v27 = vpop.eup %1636  ;;  %v138_v10 = vld [vmem:[#allocation6 + $0x18] sm:$0xff]  ;;  %v197_v19 = vmul.f32 0.5, %v133_v12 }
  0x37   :  { %927 = vmatmul.bf16.vlgmr.msra.gmra.mxu0 %v839_v23  ;;  %967 = vmatmul.bf16.vlgmr.msra.gmra.mxu2 %v847_v24  ;;  %v1054_v23 = vld [vmem:[#allocation9 + $0x70] sm:$0xff]  ;;  %1640 = vtanh.f32 %v193_v20  ;;  %v1053_v24 = vld [vmem:[#allocation9 + $0x68] sm:$0xff]  ;;  %v1485_v18 = vmul.f32 -1.442695, %v138_v10 }
  0x38   :  { %1642 = vtanh.f32 %v194_v21  ;;  %1057 = vmatpush.msra.mxu1 %v1054_v23  ;;  %1571 = vmatpush.msra.mxu3 %v1054_v23  ;;  %v198_v21 = vmul.f32 0.5, %v134_v13 }
  0x39   :  { %1644 = vpow2.f32 %v1482_v33 }
  0x3a   :  { %1058 = vmatpush.msra.mxu1 %v1053_v24  ;;  %1572 = vmatpush.msra.mxu3 %v1053_v24  ;;  %1646 = vpow2.f32 %v1498_v39 }
  0x3b   :  { %1648 = vpow2.f32 %v1483_v41  ;;  %v139_v41 = vld [vmem:[#allocation6 + $0x20] sm:$0xff] }
  0x3c   :  { %v1639_v29 = vpop.eup %1638  ;;  %1059 = vmatpush.msra.mxu1 %v1052_v25  ;;  %1573 = vmatpush.msra.mxu3 %v1052_v25  ;;  %1650 = vtanh.f32 %v179_v44  ;;  %v155_v44 = vld [vmem:[#allocation6 + $0xa0] sm:$0xff] }
  0x3d   :  { %v1641_v31 = vpop.eup %1640  ;;  %v844_v42 = vpack.c.bf16 %v1639_v29, %v1637_v27 }
  0x3e   :  { %v1643_v34 = vpop.eup %1642  ;;  %1060 = vmatpush.msra.mxu1 %v1051_v28  ;;  %1574 = vmatpush.msra.mxu3 %v1051_v28 }
  0x3f   :  { %v852_v43 = vpack.c.bf16 %v1643_v34, %v1641_v31  ;;  %v1645_v53 = vpop.eup %1644 }
  0x40   :  { %1061 = vmatpush.msra.mxu1 %v1050_v32  ;;  %1575 = vmatpush.msra.mxu3 %v1050_v32  ;;  %v1647_v56 = vpop.eup %1646  ;;  %v2044_v60 = vadd.f32 1.0, %v1645_v53  ;;  %v1502_v53 = vmul.f32 -1.442695, %v155_v44 }
  0x41   :  { %v1649_v59 = vpop.eup %1648  ;;  %v2046_v3 = vadd.f32 1.0, %v1647_v56 }
  0x42   :  { %v1651_v61 = vpop.eup %1650  ;;  %v2048_v6 = vadd.f32 1.0, %v1649_v59  ;;  %vm364_vm0 = vweird.f32 %v2044_v60  ;;  %v370_v55 = vand.u32 2147483648, %v2044_v60 }
  0x43   :  { %vm604_vm2 = vweird.f32 %v2046_v3 }
  0x44   :  { %vm379_vm4 = vweird.f32 %v2048_v6 }
  0x47   :  { %932 = vmatmul.bf16.gmra.mxu0 %v840_v37  ;;  %972 = vmatmul.bf16.gmra.mxu2 %v848_v38  ;;  %v116_v37 = vld [vmem:[#allocation3 + $0x68] sm:$0xff] }
  0x48   :  { %v1049_v38 = vld [vmem:[#allocation9 + $0x48] sm:$0xff]  ;;  %v180_v47 = vmul.f32 0.5, %v116_v37 }
  0x49   :  { %1062 = vmatpush.msra.mxu1 %v1049_v38  ;;  %1576 = vmatpush.msra.mxu3 %v1049_v38  ;;  %v154_v38 = vld [vmem:[#allocation6 + $0x98] sm:$0xff] }
  0x4a   :  { %1652 = vtanh.f32 %v180_v47  ;;  %v1501_v47 = vmul.f32 -1.442695, %v154_v38 }
  0x4b   :  { %1063 = vmatpush.msra.mxu1 %v1048_v46  ;;  %1577 = vmatpush.msra.mxu3 %v1048_v46  ;;  %1654 = vtanh.f32 %v195_v48  ;;  %v140_v48 = vld [vmem:[#allocation6 + $0x28] sm:$0xff] }
  0x4c   :  { %1656 = vtanh.f32 %v196_v49 }
  0x4d   :  { %1064 = vmatpush.msra.mxu1 %v1047_v50  ;;  %1578 = vmatpush.msra.mxu3 %v1047_v50 }
  0x57   :  { %937 = vmatmul.bf16.gmra.mxu0 %v841_v51  ;;  %977 = vmatmul.bf16.gmra.mxu2 %v849_v52  ;;  %v1046_v51 = vld [vmem:[#allocation9 + $0x30] sm:$0xff] }
  0x58   :  { %v117_v52 = vld [vmem:[#allocation3 + $0x70] sm:$0xff]  ;;  %1065 = vmatpush.msra.mxu1 %v1046_v51  ;;  %1579 = vmatpush.msra.mxu3 %v1046_v51  ;;  %v1486_v51 = vmul.f32 -1.442695, %v139_v41 }
  0x59   :  { %v181_v57 = vmul.f32 0.5, %v117_v52  ;;  %v368_v52 = vand.u32 2147483647, %v2044_v60  ;;  %v141_v41 = vld [vmem:[#allocation6 + $0x30] sm:$0xff] }
  0x5a   :  { %1066 = vmatpush.msra.mxu1 %v1045_v54  ;;  %1580 = vmatpush.msra.mxu3 %v1045_v54 }
  0x5b   :  { %1658 = vtanh.f32 %v181_v57  ;;  %v1487_v57 = vmul.f32 -1.442695, %v140_v48  ;;  %vm2119_vm8 = vcmp.eq.f32.partialorder %v368_v52, 8.507059e+37 }
  0x5c   :  { %1067 = vmatpush.msra.mxu1 %v1044_v58  ;;  %1581 = vmatpush.msra.mxu3 %v1044_v58  ;;  %1660 = vrcp.f32 %v2044_v60 }
  0x5d   :  { %1662 = vpow2.f32 %v1499_v63 }
  0x5e   :  { %1068 = vmatpush.msra.mxu1 %v1043_v62  ;;  %1582 = vmatpush.msra.mxu3 %v1043_v62  ;;  %1664 = vrcp.f32 %v2046_v3 }
  0x5f   :  { %1666 = vrcp.f32 %v2048_v6 }
  0x60   :  { %1069 = vmatpush.msra.mxu1 %v1042_v5  ;;  %1583 = vmatpush.msra.mxu3 %v1042_v5  ;;  %1668 = vpow2.f32 %v1484_v9 }
  0x62   :  { %1070 = vmatpush.msra.mxu1 %v1041_v17  ;;  %1584 = vmatpush.msra.mxu3 %v1041_v17 }
  0x64   :  { %1071 = vmatpush.msra.mxu1 %v1040_v22  ;;  %1585 = vmatpush.msra.mxu3 %v1040_v22 }
  0x67   :  { %942 = vmatmul.bf16.gmra.mxu0 %v842_v1  ;;  %982 = vmatmul.bf16.gmra.mxu2 %v850_v2  ;;  %v1653_v1 = vpop.eup %1652  ;;  %v118_v2 = vld [vmem:[#allocation3 + $0x78] sm:$0xff] }
  0x68   :  { %v1655_v4 = vpop.eup %1654  ;;  %v182_v11 = vmul.f32 0.5, %v118_v2  ;;  %v608_v2 = vand.u32 2147483647, %v2046_v3 }
  0x69   :  { %v1657_v8 = vpop.eup %1656 }
  0x6a   :  { %v1659_v20 = vpop.eup %1658  ;;  %1670 = vtanh.f32 %v182_v11  ;;  %vm609_vm10 = vcmp.eq.f32.partialorder %v608_v2, 8.507059e+37 }
  0x6b   :  { %v2053_v23 = vpop.eup %1660  ;;  %1672 = vpow2.f32 %v1500_v14  ;;  %v371_v14 = vor.u32 1.1754944e-38, %v370_v55 }
  0x6c   :  { %v1663_v24 = vpop.eup %1662  ;;  %1674 = vpow2.f32 %v1485_v18  ;;  %v360_v27 = vmul.f32 %v2053_v23, %v2044_v60  ;;  %vm365_vm1 = vweird.f32 %v2053_v23 }
  0x6d   :  { %v2055_v25 = vpop.eup %1664  ;;  %1676 = vtanh.f32 %v197_v19  ;;  %v2061_v29 = vadd.f32 1.0, %v1663_v24  ;;  %vm2098_vm6 = vmor %vm364_vm0, %vm365_vm1 }
  0x6e   :  { %v2057_v26 = vpop.eup %1666  ;;  %1678 = vtanh.f32 %v198_v21  ;;  %v600_v32 = vmul.f32 %v2055_v25, %v2046_v3  ;;  %v361_v34 = vsub.f32 1.0, %v360_v27  ;;  %vm605_vm3 = vweird.f32 %v2055_v25 }
  0x6f   :  { %v1669_v28 = vpop.eup %1668  ;;  %v375_v35 = vmul.f32 %v2057_v26, %v2048_v6  ;;  %1680 = vrcp.f32 %v2061_v29  ;;  %vm380_vm5 = vweird.f32 %v2057_v26  ;;  %vm2111_vm7 = vmor %vm604_vm2, %vm605_vm3  ;;  %v625_v24 = vand.u32 2147483648, %v2061_v29 }
  0x70   :  { %v1671_v30 = vpop.eup %1670  ;;  %v2067_v36 = vadd.f32 1.0, %v1669_v28  ;;  %v362_v45 = vmul.f32 %v2053_v23, %v361_v34  ;;  %vm2125_vm9 = vmor %vm379_vm4, %vm380_vm5  ;;  %vm619_vm12 = vweird.f32 %v2061_v29 }
  0x71   :  { %v1673_v31 = vpop.eup %1672  ;;  %v376_v46 = vsub.f32 1.0, %v375_v35  ;;  %v846_v49 = vpack.c.bf16 %v1671_v30, %v1659_v20  ;;  %v156_v35 = vld [vmem:[#allocation6 + $0xa8] sm:$0xff] }
  0x72   :  { %v1675_v33 = vpop.eup %1674  ;;  %v2070_v40 = vadd.f32 1.0, %v1673_v31  ;;  %1682 = vrcp.f32 %v2067_v36  ;;  %v363_v58 = vadd.f32 %v2053_v23, %v362_v45  ;;  %v400_v45 = vand.u32 2147483648, %v2067_v36 }
  0x73   :  { %v1677_v37 = vpop.eup %1676  ;;  %v377_v59 = vmul.f32 %v2057_v26, %v376_v46  ;;  %vm394_vm14 = vweird.f32 %v2067_v36 }
  0x74   :  { %v1679_v39 = vpop.eup %1678  ;;  %1684 = vrcp.f32 %v2070_v40  ;;  %v367_v13 = vsel %vm2098_vm6, %v2053_v23, %v363_v58  ;;  %vm634_vm1 = vweird.f32 %v2070_v40  ;;  %v640_v58 = vand.u32 2147483648, %v2070_v40 }
  0x75   :  { %v854_v50 = vpack.c.bf16 %v1679_v39, %v1677_v37  ;;  %v2079_v54 = vpop.eup %1680  ;;  %v378_v60 = vadd.f32 %v2057_v26, %v377_v59  ;;  %v623_v37 = vand.u32 2147483647, %v2061_v29  ;;  %v638_v0 = vand.u32 2147483647, %v2070_v40 }
  0x76   :  { %v615_v63 = vmul.f32 %v2079_v54, %v2061_v29  ;;  %vm620_vm13 = vweird.f32 %v2079_v54  ;;  %v401_v7 = vor.u32 1.1754944e-38, %v400_v45 }
  0x77   :  { %947 = vmatmul.bf16.gmra.mxu0 %v843_v15  ;;  %987 = vmatmul.bf16.gmra.mxu2 %v851_v16  ;;  %v845_v15 = vpack.c.bf16 %v1653_v1, %v1651_v61  ;;  %v853_v16 = vpack.c.bf16 %v1657_v8, %v1655_v4  ;;  %v610_v61 = vand.u32 2147483648, %v2046_v3  ;;  %v385_v4 = vand.u32 2147483648, %v2048_v6  ;;  %vm2179_vm0 = vmor %vm619_vm12, %vm620_vm13 }
  0x78   :  { %v2090_v62 = vpop.eup %1682  ;;  %v383_v8 = vand.u32 2147483647, %v2048_v6  ;;  %v382_v21 = vsel %vm2125_vm9, %v2057_v26, %v378_v60  ;;  %vm2204_vm6 = vcmp.eq.f32.partialorder %v623_v37, 8.507059e+37 }
  0x79   :  { %v390_v3 = vmul.f32 %v2090_v62, %v2067_v36  ;;  %v386_v18 = vor.u32 1.1754944e-38, %v385_v4  ;;  %vm395_vm15 = vweird.f32 %v2090_v62  ;;  %v159_v4 = vld [vmem:[#allocation6 + $0xc0] sm:$0xff] }
  0x7a   :  { %v2105_v5 = vpop.eup %1684  ;;  %vm384_vm11 = vcmp.eq.f32.partialorder %v383_v8, 8.507059e+37  ;;  %vm2191_vm3 = vmor %vm394_vm14, %vm395_vm15 }
  0x7b   :  { %v630_v19 = vmul.f32 %v2105_v5, %v2070_v40  ;;  %v391_v27 = vsub.f32 1.0, %v390_v3  ;;  %vm635_vm2 = vweird.f32 %v2105_v5 }
  0x7d   :  { %v631_v26 = vsub.f32 1.0, %v630_v19  ;;  %v392_v44 = vmul.f32 %v2090_v62, %v391_v27 }
  0x87   :  { %952 = vmatmul.bf16.gmra.mxu0 %v844_v42  ;;  %992 = vmatmul.bf16.gmra.mxu2 %v852_v43  ;;  %v601_v42 = vsub.f32 1.0, %v600_v32  ;;  %v2072_v43 = vadd.f32 1.0, %v1675_v33  ;;  %v2152_v33 = vsel %vm384_vm11, %v386_v18, %v382_v21 }
  0x89   :  { %v602_v56 = vmul.f32 %v2055_v25, %v601_v42  ;;  %1686 = vrcp.f32 %v2072_v43  ;;  %v2161_v42 = vor.u32 1.1754944e-38, %v625_v24  ;;  %vm409_vm4 = vweird.f32 %v2072_v43 }
  0x8a   :  { %1688 = vpow2.f32 %v1501_v47  ;;  %v1503_v47 = vmul.f32 -1.442695, %v156_v35  ;;  %v413_v10 = vand.u32 2147483647, %v2072_v43 }
  0x8b   :  { %1690 = vpow2.f32 %v1486_v51  ;;  %v603_v1 = vadd.f32 %v2055_v25, %v602_v56  ;;  %v157_v51 = vld [vmem:[#allocation6 + $0xb0] sm:$0xff] }
  0x8c   :  { %1692 = vpow2.f32 %v1502_v53  ;;  %v398_v53 = vand.u32 2147483647, %v2067_v36  ;;  %v1504_v29 = vmul.f32 -1.442695, %v157_v51  ;;  %v142_v36 = vld [vmem:[#allocation6 + $0x38] sm:$0xff]  ;;  %vm414_vm11 = vcmp.eq.f32.partialorder %v413_v10, 8.507059e+37 }
  0x8d   :  { %1694 = vpow2.f32 %v1487_v57  ;;  %v607_v6 = vsel %vm2111_vm7, %v2055_v25, %v603_v1  ;;  %v372_v25 = vsel %vm2119_vm8, %v371_v14, %v367_v13  ;;  %v393_v57 = vadd.f32 %v2090_v62, %v392_v44  ;;  %vm2212_vm7 = vmor %vm634_vm1, %vm635_vm2 }
  0x8e   :  { %v415_v1 = vand.u32 2147483648, %v2072_v43  ;;  %vm2226_vm8 = vcmp.eq.f32.partialorder %v398_v53, 8.507059e+37  ;;  %v641_v14 = vor.u32 1.1754944e-38, %v640_v58 }
  0x8f   :  { %v2117_v9 = vpop.eup %1686  ;;  %v397_v13 = vsel %vm2191_vm3, %v2090_v62, %v393_v57  ;;  %v1489_v62 = vmul.f32 -1.442695, %v142_v36 }
  0x90   :  { %v1689_v12 = vpop.eup %1688  ;;  %v405_v22 = vmul.f32 %v2117_v9, %v2072_v43  ;;  %vm410_vm5 = vweird.f32 %v2117_v9  ;;  %v416_v19 = vor.u32 1.1754944e-38, %v415_v1 }
  0x91   :  { %v1691_v17 = vpop.eup %1690  ;;  %v2145_v28 = vadd.f32 1.0, %v1689_v12  ;;  %vm2234_vm9 = vmor %vm409_vm4, %vm410_vm5 }
  0x92   :  { %v1693_v20 = vpop.eup %1692  ;;  %v2150_v32 = vadd.f32 1.0, %v1691_v17  ;;  %v406_v38 = vsub.f32 1.0, %v405_v22 }
  0x93   :  { %v1695_v23 = vpop.eup %1694  ;;  %v2155_v34 = vadd.f32 1.0, %v1693_v20  ;;  %1696 = vrcp.f32 %v2145_v28  ;;  %vm649_vm12 = vweird.f32 %v2145_v28 }
  0x94   :  { %v2159_v39 = vadd.f32 1.0, %v1695_v23  ;;  %1698 = vrcp.f32 %v2150_v32  ;;  %v407_v55 = vmul.f32 %v2117_v9, %v406_v38  ;;  %vm424_vm13 = vweird.f32 %v2150_v32 }
  0x95   :  { %1700 = vrcp.f32 %v2155_v34  ;;  %v670_v59 = vand.u32 2147483648, %v2155_v34  ;;  %v668_v36 = vand.u32 2147483647, %v2155_v34 }
  0x96   :  { %1702 = vrcp.f32 %v2159_v39  ;;  %v408_v8 = vadd.f32 %v2117_v9, %v407_v55  ;;  %vm439_vm2 = vweird.f32 %v2159_v39 }
  0x97   :  { %957 = vmatmul.bf16.gmra.mxu0 %v845_v15  ;;  %997 = vmatmul.bf16.gmra.mxu2 %v853_v16  ;;  %v611_v15 = vor.u32 1.1754944e-38, %v610_v61  ;;  %v616_v16 = vsub.f32 1.0, %v615_v63  ;;  %1704 = vpow2.f32 %v1503_v47 }
  0x98   :  { %v412_v22 = vsel %vm2234_vm9, %v2117_v9, %v408_v8  ;;  %v158_v9 = vld [vmem:[#allocation6 + $0xb8] sm:$0xff] }
  0x99   :  { %v612_v30 = vsel %vm609_vm10, %v611_v15, %v607_v6  ;;  %v617_v31 = vmul.f32 %v2079_v54, %v616_v16  ;;  %v2197_v61 = vpop.eup %1696  ;;  %vm639_vm10 = vcmp.eq.f32.partialorder %v638_v0, 8.507059e+37 }
  0x9a   :  { %v2202_v2 = vpop.eup %1698  ;;  %v645_v17 = vmul.f32 %v2197_v61, %v2145_v28  ;;  %vm650_vm14 = vweird.f32 %v2197_v61 }
  0x9b   :  { %v618_v46 = vadd.f32 %v2079_v54, %v617_v31  ;;  %v2218_v11 = vpop.eup %1700  ;;  %v420_v43 = vmul.f32 %v2202_v2, %v2150_v32  ;;  %vm425_vm15 = vweird.f32 %v2202_v2  ;;  %vm2292_vm3 = vmor %vm649_vm12, %vm650_vm14 }
  0x9c   :  { %v2238_v16 = vpop.eup %1702  ;;  %v646_v31 = vsub.f32 1.0, %v645_v17  ;;  %vm665_vm1 = vweird.f32 %v2218_v11  ;;  %vm2305_vm5 = vmor %vm424_vm13, %vm425_vm15  ;;  %v1506_v17 = vmul.f32 -1.442695, %v159_v4 }
  0x9d   :  { %v622_v12 = vsel %vm2179_vm0, %v2079_v54, %v618_v46  ;;  %v1705_v20 = vpop.eup %1704  ;;  %v435_v27 = vmul.f32 %v2238_v16, %v2159_v39  ;;  %v421_v35 = vsub.f32 1.0, %v420_v43  ;;  %vm664_vm0 = vweird.f32 %v2155_v34 }
  0x9e   :  { %v627_v24 = vsel %vm2204_vm6, %v2161_v42, %v622_v12  ;;  %v2263_v37 = vadd.f32 1.0, %v1705_v20  ;;  %v430_v42 = vand.u32 2147483648, %v2150_v32  ;;  %v647_v51 = vmul.f32 %v2197_v61, %v646_v31  ;;  %v144_v20 = vld [vmem:[#allocation6 + $0x48] sm:$0xff] }
  0x9f   :  { %v436_v47 = vsub.f32 1.0, %v435_v27  ;;  %v422_v55 = vmul.f32 %v2202_v2, %v421_v35  ;;  %vm440_vm4 = vweird.f32 %v2238_v16  ;;  %v445_v12 = vand.u32 2147483648, %v2159_v39 }
  0xa0   :  { %v648_v1 = vadd.f32 %v2197_v61, %v647_v51  ;;  %v671_v43 = vor.u32 1.1754944e-38, %v670_v59  ;;  %vm2337_vm9 = vmor %vm439_vm2, %vm440_vm4  ;;  %v1491_v31 = vmul.f32 -1.442695, %v144_v20  ;;  %vm679_vm12 = vweird.f32 %v2263_v37 }
  0xa1   :  { %v437_v0 = vmul.f32 %v2238_v16, %v436_v47  ;;  %v423_v60 = vadd.f32 %v2202_v2, %v422_v55  ;;  %v446_v27 = vor.u32 1.1754944e-38, %v445_v12  ;;  %v683_v47 = vand.u32 2147483647, %v2263_v37 }
  0xa3   :  { %vm2391_vm14 = vcmp.eq.f32.partialorder %v683_v47, 8.507059e+37 }
  0xa7   :  { %962 = vmatmul.bf16.gmra.mxu0 %v846_v49  ;;  %1002 = vmatmul.bf16.gmra.mxu2 %v854_v50  ;;  %v632_v49 = vmul.f32 %v2105_v5, %v631_v26  ;;  %v1488_v50 = vmul.f32 -1.442695, %v141_v41  ;;  %v655_v26 = vand.u32 2147483648, %v2145_v28  ;;  %v653_v41 = vand.u32 2147483647, %v2145_v28 }
  0xa8   :  { %v443_v28 = vand.u32 2147483647, %v2159_v39 }
  0xa9   :  { %v633_v63 = vadd.f32 %v2105_v5, %v632_v49  ;;  %1706 = vpow2.f32 %v1488_v50  ;;  %v143_v49 = vld [vmem:[#allocation6 + $0x40] sm:$0xff]  ;;  %v656_v10 = vor.u32 1.1754944e-38, %v655_v26  ;;  %vm2313_vm6 = vcmp.eq.f32.partialorder %v653_v41, 8.507059e+37 }
  0xaa   :  { %1708 = vpow2.f32 %v1504_v29  ;;  %v1490_v29 = vmul.f32 -1.442695, %v143_v49 }
  0xab   :  { %v637_v18 = vsel %vm2212_vm7, %v2105_v5, %v633_v63  ;;  %v660_v5 = vmul.f32 %v2218_v11, %v2155_v34  ;;  %1710 = vpow2.f32 %v1489_v62  ;;  %vm2322_vm7 = vmor %vm664_vm0, %vm665_vm1 }
  0xac   :  { %1712 = vrcp.f32 %v2263_v37 }
  0xad   :  { %v661_v46 = vsub.f32 1.0, %v660_v5 }
  0xaf   :  { %v1707_v23 = vpop.eup %1706  ;;  %v662_v63 = vmul.f32 %v2218_v11, %v661_v46 }
  0xb0   :  { %v1709_v38 = vpop.eup %1708  ;;  %v2268_v44 = vadd.f32 1.0, %v1707_v23  ;;  %v652_v23 = vsel %vm2292_vm3, %v2197_v61, %v648_v1 }
  0xb1   :  { %v2277_v56 = vadd.f32 1.0, %v1709_v38  ;;  %v1711_v57 = vpop.eup %1710  ;;  %v663_v15 = vadd.f32 %v2218_v11, %v662_v63  ;;  %v657_v35 = vsel %vm2313_vm6, %v656_v10, %v652_v23 }
  0xb2   :  { %1714 = vrcp.f32 %v2268_v44  ;;  %v2299_v8 = vadd.f32 1.0, %v1711_v57  ;;  %vm454_vm13 = vweird.f32 %v2268_v44  ;;  %v460_v59 = vand.u32 2147483648, %v2268_v44 }
  0xb3   :  { %v667_v61 = vsel %vm2322_vm7, %v2218_v11, %v663_v15  ;;  %v161_v15 = vld [vmem:[#allocation6 + $0xd0] sm:$0xff]  ;;  %vm694_vm3 = vweird.f32 %v2277_v56 }
  0xb4   :  { %v928_v48 = vpop.f32.mrf.mxu0  ;;  %vm469_vm7 = vweird.f32 %v2299_v8 }
  0xb5   :  { %v1008_v52 = vmul.f32 %v928_v48, %v372_v25  ;;  %v402_v25 = vsel %vm2226_vm8, %v401_v7, %v397_v13  ;;  %v1505_v48 = vmul.f32 -1.442695, %v158_v9  ;;  %v2311_v13 = vpop.eup %1712 }
  0xb6   :  { %vm680_vm15 = vweird.f32 %v2311_v13 }
  0xb7   :  { %1072 = vmatmul.f32.vlgmr.msra.gmra.mxu1 %v1008_v52  ;;  %v428_v52 = vand.u32 2147483647, %v2150_v32  ;;  %1716 = vpow2.f32 %v1505_v48  ;;  %vm2414_vm2 = vmor %vm679_vm12, %vm680_vm15 }
  0xb8   :  { %1718 = vrcp.f32 %v2277_v56  ;;  %v2327_v62 = vpop.eup %1714 }
  0xb9   :  { %1720 = vpow2.f32 %v1490_v29  ;;  %vm2329_vm8 = vcmp.eq.f32.partialorder %v428_v52, 8.507059e+37  ;;  %v685_v52 = vand.u32 2147483648, %v2263_v37  ;;  %vm455_vm1 = vweird.f32 %v2327_v62 }
  0xba   :  { %v968_v3 = vpop.f32.mrf.mxu2  ;;  %1722 = vrcp.f32 %v2299_v8  ;;  %vm2432_vm4 = vmor %vm454_vm13, %vm455_vm1 }
  0xbb   :  { %v1024_v54 = vmul.f32 %v968_v3, %v612_v30  ;;  %v642_v30 = vsel %vm639_vm10, %v641_v14, %v637_v18  ;;  %vm2347_vm10 = vcmp.eq.f32.partialorder %v668_v36, 8.507059e+37  ;;  %1724 = vpow2.f32 %v1506_v17 }
  0xbc   :  { %v930_v6 = vpop.f32.mrf.mxu0  ;;  %v672_v11 = vsel %vm2347_vm10, %v671_v43, %v667_v61  ;;  %1726 = vpow2.f32 %v1491_v31  ;;  %v686_v12 = vor.u32 1.1754944e-38, %v685_v52  ;;  %v698_v14 = vand.u32 2147483647, %v2277_v56 }
  0xbd   :  { %v1009_v21 = vmul.f32 %v930_v6, %v2152_v33  ;;  %1120 = vmatmul.f32.vlgmr.msra.gmra.mxu3 %v1024_v54  ;;  %v2260_v33 = vsel %vm414_vm11, %v416_v19, %v412_v22  ;;  %v438_v54 = vadd.f32 %v2238_v16, %v437_v0  ;;  %v431_v19 = vor.u32 1.1754944e-38, %v430_v42  ;;  %v160_v42 = vld [vmem:[#allocation6 + $0xc8] sm:$0xff] }
  0xbe   :  { %vm444_vm11 = vcmp.eq.f32.partialorder %v443_v28, 8.507059e+37  ;;  %v1507_v29 = vmul.f32 -1.442695, %v160_v42  ;;  %v461_v17 = vor.u32 1.1754944e-38, %v460_v59  ;;  %vm2437_vm6 = vcmp.eq.f32.partialorder %v698_v14, 8.507059e+37 }
  0xbf   :  { %1075 = vmatmul.f32.gmra.mxu1 %v1009_v21  ;;  %v1717_v21 = vpop.eup %1716 }
  0xc0   :  { %v2365_v26 = vadd.f32 1.0, %v1717_v21  ;;  %v146_v21 = vld [vmem:[#allocation6 + $0x58] sm:$0xff] }
  0xc2   :  { %v970_v45 = vpop.f32.mrf.mxu2  ;;  %1728 = vrcp.f32 %v2365_v26  ;;  %v713_v52 = vand.u32 2147483647, %v2365_v26  ;;  %vm709_vm12 = vweird.f32 %v2365_v26 }
  0xc3   :  { %v1025_v50 = vmul.f32 %v970_v45, %v627_v24  ;;  %v427_v24 = vsel %vm2305_vm5, %v2202_v2, %v423_v60  ;;  %v442_v2 = vsel %vm2337_vm9, %v2238_v16, %v438_v54  ;;  %v700_v60 = vand.u32 2147483648, %v2277_v56 }
  0xc4   :  { %v933_v53 = vpop.f32.mrf.mxu0  ;;  %v432_v38 = vsel %vm2329_vm8, %v431_v19, %v427_v24  ;;  %v2373_v41 = vsel %vm444_vm11, %v446_v27, %v442_v2  ;;  %v1508_v24 = vmul.f32 -1.442695, %v161_v15  ;;  %vm2507_vm13 = vcmp.eq.f32.partialorder %v713_v52, 8.507059e+37 }
  0xc5   :  { %v1010_v58 = vmul.f32 %v933_v53, %v402_v25  ;;  %1123 = vmatmul.f32.gmra.mxu3 %v1025_v50  ;;  %v675_v25 = vmul.f32 %v2311_v13, %v2263_v37  ;;  %v145_v50 = vld [vmem:[#allocation6 + $0x50] sm:$0xff]  ;;  %v2420_v34 = vor.u32 1.1754944e-38, %v700_v60 }
  0xc6   :  { %v1492_v36 = vmul.f32 -1.442695, %v145_v50 }
  0xc7   :  { %1078 = vmatmul.f32.gmra.mxu1 %v1010_v58  ;;  %v676_v16 = vsub.f32 1.0, %v675_v25  ;;  %v458_v58 = vand.u32 2147483647, %v2268_v44  ;;  %v475_v25 = vand.u32 2147483648, %v2299_v8 }
  0xc9   :  { %v677_v0 = vmul.f32 %v2311_v13, %v676_v16  ;;  %vm2401_vm0 = vcmp.eq.f32.partialorder %v458_v58, 8.507059e+37  ;;  %v476_v59 = vor.u32 1.1754944e-38, %v475_v25 }
  0xca   :  { %v973_v40 = vpop.f32.mrf.mxu2 }
  0xcb   :  { %v1026_v6 = vmul.f32 %v973_v40, %v642_v30  ;;  %v2355_v30 = vpop.eup %1718  ;;  %v678_v54 = vadd.f32 %v2311_v13, %v677_v0 }
  0xcc   :  { %v935_v22 = vpop.f32.mrf.mxu0  ;;  %v1721_v9 = vpop.eup %1720  ;;  %v690_v48 = vmul.f32 %v2355_v30, %v2277_v56  ;;  %vm695_vm5 = vweird.f32 %v2355_v30 }
  0xcd   :  { %v1011_v39 = vmul.f32 %v935_v22, %v2260_v33  ;;  %1126 = vmatmul.f32.gmra.mxu3 %v1026_v6  ;;  %v450_v33 = vmul.f32 %v2327_v62, %v2268_v44  ;;  %v2376_v45 = vpop.eup %1722  ;;  %v2381_v49 = vadd.f32 1.0, %v1721_v9  ;;  %v682_v44 = vsel %vm2414_vm2, %v2311_v13, %v678_v54  ;;  %vm2465_vm9 = vmor %vm694_vm3, %vm695_vm5  ;;  %v147_v54 = vld [vmem:[#allocation6 + $0x60] sm:$0xff] }
  0xce   :  { %v1725_v55 = vpop.eup %1724  ;;  %v465_v1 = vmul.f32 %v2376_v45, %v2299_v8  ;;  %v691_v7 = vsub.f32 1.0, %v690_v48  ;;  %vm470_vm8 = vweird.f32 %v2376_v45  ;;  %v687_v16 = vsel %vm2391_vm14, %v686_v12, %v682_v44  ;;  %v162_v48 = vld [vmem:[#allocation6 + $0xd8] sm:$0xff] }
  0xcf   :  { %1081 = vmatmul.f32.gmra.mxu1 %v1011_v39  ;;  %v451_v53 = vsub.f32 1.0, %v450_v33  ;;  %1730 = vrcp.f32 %v2381_v49  ;;  %v2399_v3 = vadd.f32 1.0, %v1725_v55  ;;  %v1727_v28 = vpop.eup %1726  ;;  %v1493_v33 = vmul.f32 -1.442695, %v146_v21  ;;  %vm2484_vm10 = vmor %vm469_vm7, %vm470_vm8 }
  0xd0   :  { %1732 = vpow2.f32 %v1507_v29  ;;  %v2406_v32 = vpop.eup %1728  ;;  %v466_v6 = vsub.f32 1.0, %v465_v1  ;;  %v692_v43 = vmul.f32 %v2355_v30, %v691_v7  ;;  %v2422_v20 = vadd.f32 1.0, %v1727_v28 }
  0xd1   :  { %v452_v10 = vmul.f32 %v2327_v62, %v451_v53  ;;  %1734 = vpow2.f32 %v1492_v36  ;;  %v705_v61 = vmul.f32 %v2406_v32, %v2365_v26  ;;  %v1509_v1 = vmul.f32 -1.442695, %v162_v48 }
  0xd2   :  { %v975_v46 = vpop.f32.mrf.mxu2  ;;  %1736 = vrcp.f32 %v2399_v3  ;;  %v467_v9 = vmul.f32 %v2376_v45, %v466_v6  ;;  %vm710_vm14 = vweird.f32 %v2406_v32  ;;  %v488_v14 = vand.u32 2147483647, %v2381_v49 }
  0xd3   :  { %v1027_v51 = vmul.f32 %v975_v46, %v657_v35  ;;  %v453_v23 = vadd.f32 %v2327_v62, %v452_v10  ;;  %1738 = vrcp.f32 %v2422_v20  ;;  %v706_v46 = vsub.f32 1.0, %v705_v61  ;;  %vm2529_vm15 = vmor %vm709_vm12, %vm710_vm14 }
  0xd4   :  { %v938_v57 = vpop.f32.mrf.mxu0  ;;  %1740 = vpow2.f32 %v1508_v24  ;;  %v490_v15 = vand.u32 2147483648, %v2381_v49  ;;  %v730_v6 = vand.u32 2147483648, %v2399_v3  ;;  %v1494_v24 = vmul.f32 -1.442695, %v147_v54 }
  0xd5   :  { %v1012_v63 = vmul.f32 %v938_v57, %v432_v38  ;;  %1129 = vmatmul.f32.gmra.mxu3 %v1027_v51  ;;  %v2426_v37 = vpop.eup %1730  ;;  %v473_v38 = vand.u32 2147483647, %v2299_v8  ;;  %v468_v51 = vadd.f32 %v2376_v45, %v467_v9  ;;  %1742 = vpow2.f32 %v1493_v33  ;;  %v163_v33 = vld [vmem:[#allocation6 + $0xe0] sm:$0xff]  ;;  %v164_v57 = vld [vmem:[#allocation6 + $0xe8] sm:$0xff] }
  0xd6   :  { %v1733_v2 = vpop.eup %1732  ;;  %v480_v13 = vmul.f32 %v2426_v37, %v2381_v49  ;;  %v707_v4 = vmul.f32 %v2406_v32, %v706_v46  ;;  %vm485_vm1 = vweird.f32 %v2426_v37  ;;  %vm2538_vm2 = vcmp.eq.f32.partialorder %v488_v14, 8.507059e+37 }
  0xd7   :  { %1084 = vmatmul.f32.gmra.mxu1 %v1012_v63  ;;  %v1735_v35 = vpop.eup %1734  ;;  %v2470_v47 = vadd.f32 1.0, %v1733_v2  ;;  %vm2488_vm11 = vcmp.eq.f32.partialorder %v473_v38, 8.507059e+37  ;;  %v491_v25 = vor.u32 1.1754944e-38, %v490_v15  ;;  %vm724_vm3 = vweird.f32 %v2399_v3 }
  0xd8   :  { %v2472_v50 = vpop.eup %1736  ;;  %v2476_v53 = vadd.f32 1.0, %v1735_v35  ;;  %v481_v0 = vsub.f32 1.0, %v480_v13  ;;  %v2548_v44 = vor.u32 1.1754944e-38, %v730_v6  ;;  %v503_v13 = vand.u32 2147483647, %v2422_v20 }
  0xd9   :  { %v2496_v36 = vpop.eup %1738  ;;  %v720_v60 = vmul.f32 %v2472_v50, %v2399_v3  ;;  %1744 = vrcp.f32 %v2470_v47  ;;  %vm499_vm7 = vweird.f32 %v2422_v20 }
  0xda   :  { %v978_v18 = vpop.f32.mrf.mxu2  ;;  %v1741_v10 = vpop.eup %1740  ;;  %1746 = vrcp.f32 %v2476_v53  ;;  %vm2584_vm8 = vcmp.eq.f32.partialorder %v503_v13, 8.507059e+37  ;;  %vm514_vm14 = vweird.f32 %v2476_v53  ;;  %v518_v27 = vand.u32 2147483647, %v2476_v53 }
  0xdb   :  { %v1028_v22 = vmul.f32 %v978_v18, %v672_v11  ;;  %v457_v11 = vsel %vm2432_vm4, %v2327_v62, %v453_v23  ;;  %v715_v62 = vand.u32 2147483648, %v2365_v26  ;;  %v495_v18 = vmul.f32 %v2496_v36, %v2422_v20 }
  0xdc   :  { %v940_v5 = vpop.f32.mrf.mxu0  ;;  %v462_v55 = vsel %vm2401_vm0, %v461_v17, %v457_v11  ;;  %v1743_v17 = vpop.eup %1742  ;;  %1748 = vpow2.f32 %v1509_v1  ;;  %v2525_v21 = vadd.f32 1.0, %v1741_v10  ;;  %vm484_vm0 = vweird.f32 %v2381_v49 }
  0xdd   :  { %v1013_v31 = vmul.f32 %v940_v5, %v2373_v41  ;;  %1132 = vmatmul.f32.gmra.mxu3 %v1028_v22  ;;  %v693_v41 = vadd.f32 %v2355_v30, %v692_v43  ;;  %v2499_v7 = vor.u32 1.1754944e-38, %v715_v62  ;;  %v708_v43 = vadd.f32 %v2406_v32, %v707_v4  ;;  %vm2557_vm4 = vmor %vm484_vm0, %vm485_vm1 }
  0xde   :  { %v728_v23 = vand.u32 2147483647, %v2399_v3  ;;  %v2543_v26 = vadd.f32 1.0, %v1743_v17  ;;  %v496_v9 = vsub.f32 1.0, %v495_v18  ;;  %1750 = vrcp.f32 %v2525_v21  ;;  %v149_v3 = vld [vmem:[#allocation6 + $0x70] sm:$0xff] }
  0xdf   :  { %1087 = vmatmul.f32.gmra.mxu1 %v1013_v31  ;;  %v697_v63 = vsel %vm2465_vm9, %v2355_v30, %v693_v41  ;;  %v472_v30 = vsel %vm2484_vm10, %v2376_v45, %v468_v51  ;;  %v482_v45 = vmul.f32 %v2426_v37, %v481_v0  ;;  %v2536_v5 = vpop.eup %1744  ;;  %v712_v38 = vsel %vm2529_vm15, %v2406_v32, %v708_v43 }
  0xe0   :  { %v702_v40 = vsel %vm2437_vm6, %v2420_v34, %v697_v63  ;;  %v477_v19 = vsel %vm2488_vm11, %v476_v59, %v472_v30  ;;  %v721_v34 = vsub.f32 1.0, %v720_v60  ;;  %v2545_v61 = vpop.eup %1746  ;;  %vm2564_vm5 = vcmp.eq.f32.partialorder %v728_v23, 8.507059e+37 }
  0xe1   :  { %v483_v31 = vadd.f32 %v2426_v37, %v482_v45  ;;  %v505_v49 = vand.u32 2147483648, %v2422_v20  ;;  %v735_v62 = vmul.f32 %v2536_v5, %v2470_v47  ;;  %1752 = vpow2.f32 %v1494_v24 }
  0xe2   :  { %v980_v56 = vpop.f32.mrf.mxu2  ;;  %v722_v41 = vmul.f32 %v2472_v50, %v721_v34  ;;  %v1749_v42 = vpop.eup %1748  ;;  %vm725_vm6 = vweird.f32 %v2472_v50  ;;  %v510_v48 = vmul.f32 %v2545_v61, %v2476_v53  ;;  %1754 = vrcp.f32 %v2543_v26 }
  0xe3   :  { %v1029_v29 = vmul.f32 %v980_v56, %v687_v16  ;;  %v148_v16 = vld [vmem:[#allocation6 + $0x68] sm:$0xff]  ;;  %v1510_v51 = vmul.f32 -1.442695, %v163_v33  ;;  %v487_v52 = vsel %vm2557_vm4, %v2426_v37, %v483_v31  ;;  %v497_v56 = vmul.f32 %v2496_v36, %v496_v9  ;;  %vm2592_vm9 = vmor %vm724_vm3, %vm725_vm6 }
  0xe4   :  { %v943_v8 = vpop.f32.mrf.mxu0  ;;  %v717_v58 = vsel %vm2507_vm13, %v2499_v7, %v712_v38  ;;  %v723_v59 = vadd.f32 %v2472_v50, %v722_v41  ;;  %v2588_v63 = vadd.f32 1.0, %v1749_v42  ;;  %vm500_vm10 = vweird.f32 %v2496_v36  ;;  %v2598_v4 = vpop.eup %1750 }
  0xe5   :  { %v1014_v28 = vmul.f32 %v943_v8, %v462_v55  ;;  %1135 = vmatmul.f32.gmra.mxu3 %v1029_v29  ;;  %v1495_v55 = vmul.f32 -1.442695, %v148_v16  ;;  %v506_v0 = vor.u32 1.1754944e-38, %v505_v49  ;;  %v736_v1 = vsub.f32 1.0, %v735_v62  ;;  %vm2613_vm12 = vmor %vm499_vm7, %vm500_vm10 }
  0xe6   :  { %v743_v8 = vand.u32 2147483647, %v2470_v47  ;;  %v492_v60 = vsel %vm2538_vm2, %v491_v25, %v487_v52  ;;  %v511_v10 = vsub.f32 1.0, %v510_v48  ;;  %1756 = vpow2.f32 %v1510_v51 }
  0xe7   :  { %1090 = vmatmul.f32.gmra.mxu1 %v1014_v28  ;;  %v1511_v28 = vmul.f32 -1.442695, %v164_v57  ;;  %v1753_v30 = vpop.eup %1752  ;;  %vm739_vm11 = vweird.f32 %v2470_v47  ;;  %1758 = vpow2.f32 %v1495_v55  ;;  %v727_v54 = vsel %vm2592_vm9, %v2472_v50, %v723_v59 }
  0xe8   :  { %v2604_v14 = vpop.eup %1754  ;;  %v745_v45 = vand.u32 2147483648, %v2470_v47  ;;  %1760 = vrcp.f32 %v2588_v63  ;;  %v2619_v6 = vadd.f32 1.0, %v1753_v30  ;;  %v750_v50 = vmul.f32 %v2598_v4, %v2525_v21 }
  0xe9   :  { %v1496_v43 = vmul.f32 -1.442695, %v149_v3  ;;  %vm2624_vm13 = vcmp.eq.f32.partialorder %v743_v8, 8.507059e+37  ;;  %v512_v34 = vmul.f32 %v2545_v61, %v511_v10  ;;  %1762 = vpow2.f32 %v1511_v28 }
  0xea   :  { %v983_v39 = vpop.f32.mrf.mxu2  ;;  %vm740_vm15 = vweird.f32 %v2536_v5  ;;  %v525_v23 = vmul.f32 %v2604_v14, %v2543_v26  ;;  %1764 = vrcp.f32 %v2619_v6  ;;  %vm515_vm0 = vweird.f32 %v2545_v61 }
  0xeb   :  { %v1030_v2 = vmul.f32 %v983_v39, %v702_v40  ;;  %v498_v40 = vadd.f32 %v2496_v36, %v497_v56  ;;  %v732_v39 = vsel %vm2564_vm5, %v2548_v44, %v727_v54  ;;  %v520_v25 = vand.u32 2147483648, %v2476_v53  ;;  %vm2654_vm1 = vmor %vm739_vm11, %vm740_vm15 }
  0xec   :  { %v945_v35 = vpop.f32.mrf.mxu0  ;;  %v1757_v24 = vpop.eup %1756  ;;  %v751_v9 = vsub.f32 1.0, %v750_v50  ;;  %1766 = vpow2.f32 %v1496_v43  ;;  %v746_v13 = vor.u32 1.1754944e-38, %v745_v45  ;;  %v513_v16 = vadd.f32 %v2545_v61, %v512_v34  ;;  %vm2666_vm2 = vmor %vm514_vm14, %vm515_vm0 }
  0xed   :  { %v1015_v46 = vmul.f32 %v945_v35, %v477_v19  ;;  %1138 = vmatmul.f32.gmra.mxu3 %v1030_v2  ;;  %v737_v19 = vmul.f32 %v2536_v5, %v736_v1  ;;  %v502_v22 = vsel %vm2613_vm12, %v2496_v36, %v498_v40  ;;  %v165_v2 = vld [vmem:[#allocation6 + $0xf0] sm:$0xff]  ;;  %v1759_v36 = vpop.eup %1758  ;;  %v2644_v33 = vadd.f32 1.0, %v1757_v24  ;;  %v150_v35 = vld [vmem:[#allocation6 + $0x78] sm:$0xff] }
  0xee   :  { %v2646_v38 = vpop.eup %1760  ;;  %v507_v44 = vsel %vm2584_vm8, %v506_v0, %v502_v22  ;;  %v2659_v42 = vadd.f32 1.0, %v1759_v36  ;;  %v526_v32 = vsub.f32 1.0, %v525_v23  ;;  %v1512_v49 = vmul.f32 -1.442695, %v165_v2 }
  0xef   :  { %1093 = vmatmul.f32.gmra.mxu1 %v1015_v46  ;;  %v738_v31 = vadd.f32 %v2536_v5, %v737_v19  ;;  %1768 = vrcp.f32 %v2644_v33  ;;  %v1763_v62 = vpop.eup %1762  ;;  %vm2670_vm3 = vcmp.eq.f32.partialorder %v518_v27, 8.507059e+37  ;;  %v521_v52 = vor.u32 1.1754944e-38, %v520_v25 }
  0xf0   :  { %vm754_vm4 = vweird.f32 %v2525_v21  ;;  %v1497_v56 = vmul.f32 -1.442695, %v150_v35  ;;  %v2675_v55 = vpop.eup %1764  ;;  %v765_v59 = vmul.f32 %v2646_v38, %v2588_v63  ;;  %vm755_vm5 = vweird.f32 %v2598_v4 }
  0xf1   :  { %v742_v53 = vsel %vm2654_vm1, %v2536_v5, %v738_v31  ;;  %v758_v29 = vand.u32 2147483647, %v2525_v21  ;;  %v760_v37 = vand.u32 2147483648, %v2525_v21  ;;  %1770 = vrcp.f32 %v2659_v42  ;;  %vm2709_vm8 = vmor %vm754_vm4, %vm755_vm5 }
  0xf2   :  { %v985_v7 = vpop.f32.mrf.mxu2  ;;  %v1767_v0 = vpop.eup %1766  ;;  %v517_v1 = vsel %vm2666_vm2, %v2545_v61, %v513_v16  ;;  %v527_v5 = vmul.f32 %v2604_v14, %v526_v32  ;;  %v540_v8 = vmul.f32 %v2675_v55, %v2619_v6  ;;  %1772 = vpow2.f32 %v1512_v49 }
  0xf3   :  { %v1031_v12 = vmul.f32 %v985_v7, %v717_v58  ;;  %v752_v58 = vmul.f32 %v2598_v4, %v751_v9  ;;  %v747_v7 = vsel %vm2624_vm13, %v746_v13, %v742_v53  ;;  %vm529_vm6 = vweird.f32 %v2543_v26  ;;  %v166_v9 = vld [vmem:[#allocation6 + $0xf8] sm:$0xff] }
  0xf4   :  { %v948_v15 = vpop.f32.mrf.mxu0  ;;  %1774 = vpow2.f32 %v1497_v56  ;;  %vm530_vm7 = vweird.f32 %v2604_v14  ;;  %v533_v61 = vand.u32 2147483647, %v2543_v26  ;;  %v766_v3 = vsub.f32 1.0, %v765_v59 }
  0xf5   :  { %v1016_v18 = vmul.f32 %v948_v15, %v492_v60  ;;  %1141 = vmatmul.f32.gmra.mxu3 %v1031_v12  ;;  %v2696_v60 = vadd.f32 1.0, %v1763_v62  ;;  %v2698_v10 = vpop.eup %1768  ;;  %v753_v28 = vadd.f32 %v2598_v4, %v752_v58  ;;  %v522_v12 = vsel %vm2670_vm3, %v521_v52, %v517_v1  ;;  %vm2727_vm10 = vmor %vm529_vm6, %vm530_vm7 }
  0xf6   :  { %v535_v15 = vand.u32 2147483648, %v2543_v26  ;;  %v2714_v54 = vadd.f32 1.0, %v1767_v0  ;;  %v528_v45 = vadd.f32 %v2604_v14, %v527_v5  ;;  %vm2719_vm9 = vcmp.eq.f32.partialorder %v758_v29, 8.507059e+37 }
  0xf7   :  { %1096 = vmatmul.f32.gmra.mxu1 %v1016_v18  ;;  %v541_v18 = vsub.f32 1.0, %v540_v8  ;;  %v2717_v19 = vpop.eup %1770  ;;  %v761_v21 = vor.u32 1.1754944e-38, %v760_v37  ;;  %v780_v34 = vmul.f32 %v2698_v10, %v2644_v33  ;;  %1776 = vrcp.f32 %v2696_v60 }
  0xf8   :  { %v1773_v22 = vpop.eup %1772  ;;  %v757_v24 = vsel %vm2709_vm8, %v2598_v4, %v753_v28  ;;  %vm2737_vm11 = vcmp.eq.f32.partialorder %v533_v61, 8.507059e+37  ;;  %v767_v26 = vmul.f32 %v2646_v38, %v766_v3  ;;  %v536_v25 = vor.u32 1.1754944e-38, %v535_v15 }
  0xf9   :  { %vm769_vm12 = vweird.f32 %v2588_v63  ;;  %v773_v2 = vand.u32 2147483647, %v2588_v63  ;;  %1778 = vrcp.f32 %v2714_v54  ;;  %v532_v36 = vsel %vm2727_vm10, %v2604_v14, %v528_v45 }
  0xfa   :  { %v988_v11 = vpop.f32.mrf.mxu2  ;;  %v1775_v27 = vpop.eup %1774  ;;  %vm770_vm13 = vweird.f32 %v2646_v38  ;;  %v542_v4 = vmul.f32 %v2675_v55, %v541_v18  ;;  %v555_v31 = vmul.f32 %v2717_v19, %v2659_v42  ;;  %v762_v35 = vsel %vm2719_vm9, %v761_v21, %v757_v24 }
  0xfb   :  { %v1032_v46 = vmul.f32 %v988_v11, %v732_v39  ;;  %v775_v11 = vand.u32 2147483648, %v2588_v63  ;;  %v2755_v41 = vadd.f32 1.0, %v1773_v22  ;;  %v768_v13 = vadd.f32 %v2646_v38, %v767_v26  ;;  %vm2770_vm0 = vmor %vm769_vm12, %vm770_vm13 }
  0xfc   :  { %v950_v48 = vpop.f32.mrf.mxu0  ;;  %vm544_vm14 = vweird.f32 %v2619_v6  ;;  %vm545_vm15 = vweird.f32 %v2675_v55  ;;  %v2760_v14 = vadd.f32 1.0, %v1775_v27  ;;  %v537_v32 = vsel %vm2737_vm11, %v536_v25, %v532_v36 }
  0xfd   :  { %v1017_v57 = vmul.f32 %v950_v48, %v507_v44  ;;  %1144 = vmatmul.f32.gmra.mxu3 %v1032_v46  ;;  %v781_v44 = vsub.f32 1.0, %v780_v34  ;;  %v2762_v16 = vpop.eup %1776  ;;  %v550_v62 = vand.u32 2147483648, %v2619_v6  ;;  %v1513_v48 = vmul.f32 -1.442695, %v166_v9  ;;  %vm2787_vm2 = vmor %vm544_vm14, %vm545_vm15 }
  0xfe   :  { %v543_v51 = vadd.f32 %v2675_v55, %v542_v4  ;;  %v548_v52 = vand.u32 2147483647, %v2619_v6  ;;  %v556_v56 = vsub.f32 1.0, %v555_v31  ;;  %vm2779_vm1 = vcmp.eq.f32.partialorder %v773_v2, 8.507059e+37 }
  0xff   :  { %1099 = vmatmul.f32.gmra.mxu1 %v1017_v57  ;;  %v2777_v57 = vpop.eup %1778  ;;  %v776_v63 = vor.u32 1.1754944e-38, %v775_v11  ;;  %v782_v29 = vmul.f32 %v2698_v10, %v781_v44  ;;  %1780 = vrcp.f32 %v2755_v41  ;;  %v772_v0 = vsel %vm2770_vm0, %v2646_v38, %v768_v13 }
 0x100   :  { %v795_v1 = vmul.f32 %v2762_v16, %v2696_v60  ;;  %1782 = vrcp.f32 %v2760_v14  ;;  %v551_v6 = vor.u32 1.1754944e-38, %v550_v62  ;;  %vm784_vm3 = vweird.f32 %v2644_v33 }
 0x101   :  { %vm785_vm4 = vweird.f32 %v2698_v10  ;;  %1784 = vpow2.f32 %v1513_v48  ;;  %v547_v5 = vsel %vm2787_vm2, %v2675_v55, %v543_v51  ;;  %vm549_vm5 = vcmp.eq.f32.partialorder %v548_v52, 8.507059e+37 }
 0x102   :  { %v990_v30 = vpop.f32.mrf.mxu2  ;;  %v557_v8 = vmul.f32 %v2717_v19, %v556_v56  ;;  %v570_v38 = vmul.f32 %v2777_v57, %v2714_v54  ;;  %v783_v28 = vadd.f32 %v2698_v10, %v782_v29  ;;  %v788_v61 = vand.u32 2147483647, %v2644_v33  ;;  %vm2812_vm6 = vmor %vm784_vm3, %vm785_vm4 }
 0x103   :  { %v1033_v17 = vmul.f32 %v990_v30, %v747_v7  ;;  %v777_v7 = vsel %vm2779_vm1, %v776_v63, %v772_v0  ;;  %v790_v3 = vand.u32 2147483648, %v2644_v33  ;;  %vm559_vm7 = vweird.f32 %v2659_v42 }
 0x104   :  { %v953_v50 = vpop.f32.mrf.mxu0  ;;  %vm560_vm8 = vweird.f32 %v2717_v19  ;;  %v796_v55 = vsub.f32 1.0, %v795_v1  ;;  %v552_v15 = vsel %vm549_vm5, %v551_v6, %v547_v5  ;;  %v565_v45 = vand.u32 2147483648, %v2659_v42 }
 0x105   :  { %v1018_v23 = vmul.f32 %v953_v50, %v522_v12  ;;  %1147 = vmatmul.f32.gmra.mxu3 %v1033_v17  ;;  %v2818_v12 = vpop.eup %1780  ;;  %v563_v17 = vand.u32 2147483647, %v2659_v42  ;;  %v558_v50 = vadd.f32 %v2717_v19, %v557_v8  ;;  %v571_v43 = vsub.f32 1.0, %v570_v38  ;;  %vm2836_vm10 = vmor %vm559_vm7, %vm560_vm8 }
 0x106   :  { %v2822_v18 = vpop.eup %1782  ;;  %v787_v34 = vsel %vm2812_vm6, %v2698_v10, %v783_v28  ;;  %vm2828_vm9 = vcmp.eq.f32.partialorder %v788_v61, 8.507059e+37  ;;  %v797_v26 = vmul.f32 %v2762_v16, %v796_v55  ;;  %v810_v10 = vmul.f32 %v2818_v12, %v2755_v41 }
 0x107   :  { %1102 = vmatmul.f32.gmra.mxu1 %v1018_v23  ;;  %v1785_v21 = vpop.eup %1784  ;;  %v791_v23 = vor.u32 1.1754944e-38, %v790_v3  ;;  %vm2845_vm11 = vcmp.eq.f32.partialorder %v563_v17, 8.507059e+37  ;;  %v566_v2 = vor.u32 1.1754944e-38, %v565_v45  ;;  %vm799_vm12 = vweird.f32 %v2696_v60 }
 0x108   :  { %v2843_v27 = vadd.f32 1.0, %v1785_v21  ;;  %vm800_vm13 = vweird.f32 %v2762_v16  ;;  %v562_v42 = vsel %vm2836_vm10, %v2717_v19, %v558_v50  ;;  %v572_v36 = vmul.f32 %v2777_v57, %v571_v43 }
 0x109   :  { %v585_v4 = vmul.f32 %v2822_v18, %v2760_v14  ;;  %v792_v31 = vsel %vm2828_vm9, %v791_v23, %v787_v34  ;;  %v803_v9 = vand.u32 2147483647, %v2696_v60  ;;  %v798_v11 = vadd.f32 %v2762_v16, %v797_v26  ;;  %vm2871_vm0 = vmor %vm799_vm12, %vm800_vm13 }
 0x10a   :  { %v993_v46 = vpop.f32.mrf.mxu2  ;;  %1786 = vrcp.f32 %v2843_v27  ;;  %vm574_vm14 = vweird.f32 %v2714_v54  ;;  %vm575_vm15 = vweird.f32 %v2777_v57  ;;  %v811_v19 = vsub.f32 1.0, %v810_v10 }
 0x10b   :  { %v1034_v47 = vmul.f32 %v993_v46, %v762_v35  ;;  %v805_v35 = vand.u32 2147483648, %v2696_v60  ;;  %v567_v13 = vsel %vm2845_vm11, %v566_v2, %v562_v42  ;;  %v580_v49 = vand.u32 2147483648, %v2714_v54  ;;  %vm2878_vm1 = vmor %vm574_vm14, %vm575_vm15  ;;  %v2924_v42 = vld [vmem:[#allocation11] sm:$0xff] }
 0x10c   :  { %v955_v53 = vpop.f32.mrf.mxu0  ;;  %v573_v48 = vadd.f32 %v2777_v57, %v572_v36  ;;  %v802_v58 = vsel %vm2871_vm0, %v2762_v16, %v798_v11  ;;  %vm804_vm2 = vcmp.eq.f32.partialorder %v803_v9, 8.507059e+37  ;;  %vm814_vm4 = vweird.f32 %v2755_v41  ;;  %v2926_v36 = vld [vmem:[#allocation11 + $0x8] sm:$0xff]  ;;  %v2930_v11 = vld [vmem:[#allocation11 + $0x10] sm:$0xff] }
 0x10d   :  { %v1019_v37 = vmul.f32 %v955_v53, %v537_v32  ;;  %1150 = vmatmul.f32.gmra.mxu3 %v1034_v47  ;;  %v578_v32 = vand.u32 2147483647, %v2714_v54  ;;  %v586_v47 = vsub.f32 1.0, %v585_v4  ;;  %v806_v52 = vor.u32 1.1754944e-38, %v805_v35 }
 0x10e   :  { %v812_v54 = vmul.f32 %v2818_v12, %v811_v19  ;;  %v581_v59 = vor.u32 1.1754944e-38, %v580_v49  ;;  %vm815_vm5 = vweird.f32 %v2818_v12  ;;  %v818_v1 = vand.u32 2147483647, %v2755_v41 }
 0x10f   :  { %1105 = vmatmul.f32.gmra.mxu1 %v1019_v37  ;;  %vm2886_vm3 = vcmp.eq.f32.partialorder %v578_v32, 8.507059e+37  ;;  %v577_v37 = vsel %vm2878_vm1, %v2777_v57, %v573_v48  ;;  %v587_v16 = vmul.f32 %v2822_v18, %v586_v47  ;;  %v807_v0 = vsel %vm804_vm2, %v806_v52, %v802_v58  ;;  %vm2904_vm8 = vmor %vm814_vm4, %vm815_vm5 }
 0x110   :  { %v1787_v53 = vpop.eup %1786  ;;  %v820_v6 = vand.u32 2147483648, %v2755_v41  ;;  %v813_v5 = vadd.f32 %v2818_v12, %v812_v54  ;;  %vm589_vm6 = vweird.f32 %v2760_v14  ;;  %vm590_vm7 = vweird.f32 %v2822_v18 }
 0x111   :  { %v825_v29 = vmul.f32 %v1787_v53, %v2843_v27  ;;  %v582_v57 = vsel %vm2886_vm3, %v581_v59, %v577_v37  ;;  %v595_v28 = vand.u32 2147483648, %v2760_v14  ;;  %v588_v41 = vadd.f32 %v2822_v18, %v587_v16  ;;  %vm2911_vm9 = vmor %vm589_vm6, %vm590_vm7 }
 0x112   :  { %v995_v40 = vpop.f32.mrf.mxu2  ;;  %v593_v3 = vand.u32 2147483647, %v2760_v14  ;;  %v821_v55 = vor.u32 1.1754944e-38, %v820_v6  ;;  %v817_v17 = vsel %vm2904_vm8, %v2818_v12, %v813_v5  ;;  %vm819_vm10 = vcmp.eq.f32.partialorder %v818_v1, 8.507059e+37 }
 0x113   :  { %v1035_v33 = vmul.f32 %v995_v40, %v777_v7  ;;  %v826_v8 = vsub.f32 1.0, %v825_v29  ;;  %v592_v14 = vsel %vm2911_vm9, %v2822_v18, %v588_v41  ;;  %vm829_vm12 = vweird.f32 %v2843_v27 }
 0x114   :  { %v958_v20 = vpop.f32.mrf.mxu0  ;;  %vm594_vm11 = vcmp.eq.f32.partialorder %v593_v3, 8.507059e+37  ;;  %vm830_vm13 = vweird.f32 %v1787_v53  ;;  %v822_v50 = vsel %vm819_vm10, %v821_v55, %v817_v17  ;;  %v835_v43 = vand.u32 2147483648, %v2843_v27 }
 0x115   :  { %v1020_v39 = vmul.f32 %v958_v20, %v552_v15  ;;  %1153 = vmatmul.f32.gmra.mxu3 %v1035_v33  ;;  %v827_v45 = vmul.f32 %v1787_v53, %v826_v8  ;;  %v596_v33 = vor.u32 1.1754944e-38, %v595_v28  ;;  %v833_v20 = vand.u32 2147483647, %v2843_v27  ;;  %vm831_vm14 = vmor %vm829_vm12, %vm830_vm13 }
 0x116   :  { %v836_v24 = vor.u32 1.1754944e-38, %v835_v43  ;;  %v2948_v41 = vstv %s3109_s5  ;;  %vm1447_vm7 = vcmask 1041409   ;;  %s1981_s5 = smov [#allocation12]  }
 0x117   :  { %1108 = vmatmul.f32.gmra.mxu1 %v1020_v39  ;;  %v828_v21 = vadd.f32 %v1787_v53, %v827_v45  ;;  %v597_v12 = vsel %vm594_vm11, %v596_v33, %v592_v14  ;;  %vm834_vm15 = vcmp.eq.f32.partialorder %v833_v20, 8.507059e+37  ;;  %s1468_s23 = sshll.u32 %s1981_s5, 4  ;;  %s1469_s23 = int_to_ptr.vmem [resolvable:$true] %s1468_s23 }
 0x119   :  { %v832_v26 = vsel %vm831_vm14, %v1787_v53, %v828_v21 }
 0x11a   :  { %v998_v44 = vpop.f32.mrf.mxu2  ;;  %v837_v18 = vsel %vm834_vm15, %v836_v24, %v832_v26 }
 0x11b   :  { %v1036_v62 = vmul.f32 %v998_v44, %v792_v31 }
 0x11c   :  { %v960_v51 = vpop.f32.mrf.mxu0 }
 0x11d   :  { %v1021_v60 = vmul.f32 %v960_v51, %v567_v13  ;;  %1156 = vmatmul.f32.gmra.mxu3 %v1036_v62  ;;  %v2935_v62 = vld [vmem:[#allocation11 + $0x18] sm:$0xff] }
 0x11f   :  { %1111 = vmatmul.f32.gmra.mxu1 %v1021_v60 }
 0x122   :  { %v1000_v38 = vpop.f32.mrf.mxu2 }
 0x123   :  { %v1037_v61 = vmul.f32 %v1000_v38, %v807_v0 }
 0x124   :  { %v963_v30 = vpop.f32.mrf.mxu0 }
 0x125   :  { %v1022_v15 = vmul.f32 %v963_v30, %v582_v57  ;;  %1159 = vmatmul.f32.gmra.mxu3 %v1037_v61 }
 0x127   :  { %1114 = vmatmul.f32.gmra.mxu1 %v1022_v15 }
 0x12a   :  { %v1003_v34 = vpop.f32.mrf.mxu2 }
 0x12b   :  { %v1038_v22 = vmul.f32 %v1003_v34, %v822_v50 }
 0x12c   :  { %v965_v23 = vpop.f32.mrf.mxu0 }
 0x12d   :  { %v1023_v39 = vmul.f32 %v965_v23, %v597_v12  ;;  %1162 = vmatmul.f32.gmra.mxu3 %v1038_v22 }
 0x12f   :  { %1117 = vmatmul.f32.gmra.mxu1 %v1023_v39 }
 0x132   :  { %v1005_v10 = vpop.f32.mrf.mxu2 }
 0x133   :  { %v1039_v25 = vmul.f32 %v1005_v10, %v837_v18 }
 0x134   :  { %v1073_v2 = vpop.f32.mrf.mxu1 }
 0x135   :  { %1165 = vmatmul.f32.gmra.mxu3 %v1039_v25  ;;  %v1173_v27 = vmul.f32 %v2924_v42, %v1073_v2 }
 0x13c   :  { %v1076_v4 = vpop.f32.mrf.mxu1 }
 0x13d   :  { %v1174_v31 = vmul.f32 %v2926_v36, %v1076_v4 }
 0x13f   :  { %v1205_v9 = vadd.f32 %v1174_v31, %v1173_v27 }
 0x140   :  { %v1121_v35 = vpop.f32.mrf.mxu3 }
 0x141   :  { %v1189_v32 = vmul.f32 %v2924_v42, %v1121_v35 }
 0x144   :  { %v1079_v19 = vpop.f32.mrf.mxu1 }
 0x145   :  { %v1175_v44 = vmul.f32 %v2930_v11, %v1079_v19 }
 0x147   :  { %v1206_v13 = vadd.f32 %v1205_v9, %v1175_v44 }
 0x148   :  { %v1124_v46 = vpop.f32.mrf.mxu3 }
 0x149   :  { %v1190_v49 = vmul.f32 %v2926_v36, %v1124_v46 }
 0x14b   :  { %v1241_v48 = vadd.f32 %v1190_v49, %v1189_v32 }
 0x14c   :  { %v1082_v47 = vpop.f32.mrf.mxu1 }
 0x14d   :  { %v1176_v51 = vmul.f32 %v2935_v62, %v1082_v47 }
 0x14f   :  { %v1207_v52 = vadd.f32 %v1206_v13, %v1176_v51 }
 0x150   :  { %v1127_v56 = vpop.f32.mrf.mxu3 }
 0x151   :  { %v1208_v53 = vrot.slane %v1207_v52, 4  ;;  %v1191_v60 = vmul.f32 %v2930_v11, %v1127_v56 }
 0x153   :  { %v1242_v58 = vadd.f32 %v1241_v48, %v1191_v60  ;;  %v1209_v63 = vadd.f32 %v1208_v53, %v1207_v52 }
 0x154   :  { %v1085_v54 = vpop.f32.mrf.mxu1 }
 0x155   :  { %v1210_v29 = vrot.slane %v1209_v63, 2  ;;  %v1177_v16 = vmul.f32 %v2924_v42, %v1085_v54 }
 0x157   :  { %v1211_v6 = vadd.f32 %v1210_v29, %v1209_v63 }
 0x158   :  { %v1130_v59 = vpop.f32.mrf.mxu3 }
 0x159   :  { %v1192_v37 = vmul.f32 %v2935_v62, %v1130_v59  ;;  %v1212_v57 = vrot.slane %v1211_v6, 1 }
 0x15b   :  { %v2941_v0 = vadd.f32 %v1242_v58, %v1192_v37  ;;  %v1213_v28 = vadd.f32 %v1212_v57, %v1211_v6 }
 0x15c   :  { %v1088_v1 = vpop.f32.mrf.mxu1 }
 0x15d   :  { %v1178_v5 = vmul.f32 %v2926_v36, %v1088_v1  ;;  %v1279_v55 = vadd.f32 %v2948_v41, %v1213_v28  ;;  %v1244_v58 = vrot.slane %v2941_v0, 4 }
 0x15f   :  { %v1214_v8 = vadd.f32 %v1178_v5, %v1177_v16  ;;  %v1546_v33 = vmul.f32 -1.442695, %v1279_v55  ;;  %v1245_v6 = vadd.f32 %v1244_v58, %v2941_v0 }
 0x160   :  { %v1133_v38 = vpop.f32.mrf.mxu3 }
 0x161   :  { %v1193_v40 = vmul.f32 %v2924_v42, %v1133_v38  ;;  %1788 = vpow2.f32 %v1546_v33 }
 0x164   :  { %v1091_v7 = vpop.f32.mrf.mxu1 }
 0x165   :  { %v1179_v61 = vmul.f32 %v2930_v11, %v1091_v7 }
 0x167   :  { %v1215_v3 = vadd.f32 %v1214_v8, %v1179_v61  ;;  %v1789_v24 = vpop.eup %1788 }
 0x168   :  { %v1136_v30 = vpop.f32.mrf.mxu3  ;;  %v1311_v10 = vadd.f32 1.0, %v1789_v24 }
 0x169   :  { %v1194_v15 = vmul.f32 %v2926_v36, %v1136_v30 }
 0x16a   :  { %1790 = vrcp.f32 %v1311_v10  ;;  %vm1324_vm0 = vweird.f32 %v1311_v10  ;;  %v1330_v30 = vand.u32 2147483648, %v1311_v10 }
 0x16b   :  { %v1250_v17 = vadd.f32 %v1194_v15, %v1193_v40 }
 0x16c   :  { %v1094_v45 = vpop.f32.mrf.mxu1 }
 0x16d   :  { %v1180_v14 = vmul.f32 %v2935_v62, %v1094_v45 }
 0x16f   :  { %v1216_v50 = vadd.f32 %v1215_v3, %v1180_v14  ;;  %v1328_v3 = vand.u32 2147483647, %v1311_v10 }
 0x170   :  { %v1139_v43 = vpop.f32.mrf.mxu3  ;;  %v2956_v9 = vpop.eup %1790 }
 0x171   :  { %v1217_v21 = vrot.slane %v1216_v50, 4  ;;  %v1195_v20 = vmul.f32 %v2930_v11, %v1139_v43  ;;  %v1320_v44 = vmul.f32 %v2956_v9, %v1311_v10  ;;  %vm1325_vm1 = vweird.f32 %v2956_v9 }
 0x172   :  { %vm2975_vm3 = vmor %vm1324_vm0, %vm1325_vm1  ;;  %vm1329_vm5 = vcmp.eq.f32.partialorder %v1328_v3, 8.507059e+37 }
 0x173   :  { %v1218_v34 = vadd.f32 %v1217_v21, %v1216_v50  ;;  %v1251_v12 = vadd.f32 %v1250_v17, %v1195_v20  ;;  %v1321_v51 = vsub.f32 1.0, %v1320_v44  ;;  %v1246_v17 = vrot.slane %v1245_v6, 2 }
 0x174   :  { %v1097_v22 = vpop.f32.mrf.mxu1 }
 0x175   :  { %v1219_v23 = vrot.slane %v1218_v34, 2  ;;  %v1181_v13 = vmul.f32 %v2924_v42, %v1097_v22  ;;  %v1322_v63 = vmul.f32 %v2956_v9, %v1321_v51 }
 0x177   :  { %v1220_v39 = vadd.f32 %v1219_v23, %v1218_v34  ;;  %v1323_v7 = vadd.f32 %v2956_v9, %v1322_v63  ;;  %v1331_v34 = vor.u32 1.1754944e-38, %v1330_v30 }
 0x178   :  { %v1142_v26 = vpop.f32.mrf.mxu3 }
 0x179   :  { %v1221_v18 = vrot.slane %v1220_v39, 1  ;;  %v1196_v47 = vmul.f32 %v2935_v62, %v1142_v26  ;;  %v1327_v43 = vsel %vm2975_vm3, %v2956_v9, %v1323_v7 }
 0x17b   :  { %v1222_v25 = vadd.f32 %v1221_v18, %v1220_v39  ;;  %v1252_v54 = vadd.f32 %v1251_v12, %v1196_v47  ;;  %v1332_v18 = vsel %vm1329_vm5, %v1331_v34, %v1327_v43 }
 0x17c   :  { %v1100_v2 = vpop.f32.mrf.mxu1 }
 0x17d   :  { %v1280_v27 = vadd.f32 %v2948_v41, %v1222_v25  ;;  %v1182_v46 = vmul.f32 %v2926_v36, %v1100_v2  ;;  %v1253_v5 = vrot.slane %v1252_v54, 4 }
 0x17f   :  { %v1547_v4 = vmul.f32 -1.442695, %v1280_v27  ;;  %v1223_v52 = vadd.f32 %v1182_v46, %v1181_v13  ;;  %v1254_v45 = vadd.f32 %v1253_v5, %v1252_v54  ;;  %v1247_v27 = vadd.f32 %v1246_v17, %v1245_v6 }
 0x180   :  { %v1145_v31 = vpop.f32.mrf.mxu3 }
 0x181   :  { %1792 = vpow2.f32 %v1547_v4  ;;  %v1197_v28 = vmul.f32 %v2924_v42, %v1145_v31  ;;  %v1255_v39 = vrot.slane %v1254_v45, 2 }
 0x183   :  { %v1256_v9 = vadd.f32 %v1255_v39, %v1254_v45 }
 0x184   :  { %v1103_v35 = vpop.f32.mrf.mxu1 }
 0x185   :  { %v1183_v48 = vmul.f32 %v2930_v11, %v1103_v35  ;;  %v1257_v46 = vrot.slane %v1256_v9, 1 }
 0x187   :  { %v1793_v19 = vpop.eup %1792  ;;  %v1224_v53 = vadd.f32 %v1223_v52, %v1183_v48  ;;  %v1258_v51 = vadd.f32 %v1257_v46, %v1256_v9 }
 0x188   :  { %v1312_v32 = vadd.f32 1.0, %v1793_v19  ;;  %v1148_v49 = vpop.f32.mrf.mxu3  ;;  %v1248_v19 = vrot.slane %v1247_v27, 1 }
 0x189   :  { %v1198_v38 = vmul.f32 %v2926_v36, %v1148_v49 }
 0x18a   :  { %1794 = vrcp.f32 %v1312_v32  ;;  %v1345_v55 = vand.u32 2147483648, %v1312_v32  ;;  %v1343_v0 = vand.u32 2147483647, %v1312_v32  ;;  %vm1339_vm4 = vweird.f32 %v1312_v32 }
 0x18b   :  { %v1259_v50 = vadd.f32 %v1198_v38, %v1197_v28  ;;  %v1249_v49 = vadd.f32 %v1248_v19, %v1247_v27 }
 0x18c   :  { %v1106_v56 = vpop.f32.mrf.mxu1  ;;  %v1346_v12 = vor.u32 1.1754944e-38, %v1345_v55  ;;  %vm1344_vm8 = vcmp.eq.f32.partialorder %v1343_v0, 8.507059e+37 }
 0x18d   :  { %v1184_v60 = vmul.f32 %v2935_v62, %v1106_v56 }
 0x18f   :  { %v1225_v59 = vadd.f32 %v1224_v53, %v1184_v60  ;;  %v1283_v60 = vadd.f32 %v2948_v41, %v1249_v49 }
 0x190   :  { %v1795_v29 = vpop.eup %1794  ;;  %v1151_v37 = vpop.f32.mrf.mxu3 }
 0x191   :  { %v1335_v16 = vmul.f32 %v1795_v29, %v1312_v32  ;;  %v1226_v1 = vrot.slane %v1225_v59, 4  ;;  %v1199_v15 = vmul.f32 %v2930_v11, %v1151_v37  ;;  %vm1340_vm2 = vweird.f32 %v1795_v29 }
 0x192   :  { %vm1341_vm6 = vmor %vm1339_vm4, %vm1340_vm2 }
 0x193   :  { %v1336_v8 = vsub.f32 1.0, %v1335_v16  ;;  %v1227_v57 = vadd.f32 %v1226_v1, %v1225_v59  ;;  %v1260_v22 = vadd.f32 %v1259_v50, %v1199_v15  ;;  %v1284_v59 = vadd.f32 %v2948_v41, %v1258_v51 }
 0x194   :  { %v1109_v61 = vpop.f32.mrf.mxu1  ;;  %v1550_v16 = vmul.f32 -1.442695, %v1283_v60 }
 0x195   :  { %v1337_v40 = vmul.f32 %v1795_v29, %v1336_v8  ;;  %v1228_v33 = vrot.slane %v1227_v57, 2  ;;  %v1185_v56 = vmul.f32 %v2924_v42, %v1109_v61  ;;  %v1551_v38 = vmul.f32 -1.442695, %v1284_v59 }
 0x197   :  { %v1338_v21 = vadd.f32 %v1795_v29, %v1337_v40  ;;  %v1229_v26 = vadd.f32 %v1228_v33, %v1227_v57 }
 0x198   :  { %v1154_v20 = vpop.f32.mrf.mxu3 }
 0x199   :  { %v1200_v23 = vmul.f32 %v2935_v62, %v1154_v20  ;;  %v1342_v24 = vsel %vm1341_vm6, %v1795_v29, %v1338_v21  ;;  %v1230_v35 = vrot.slane %v1229_v26, 1  ;;  %vm1449_vm6 = vcmask 1042434  }
 0x19a   :  { %v1347_v10 = vsel %vm1344_vm8, %v1346_v12, %v1342_v24  ;;  %vm1451_vm8 = vcmask 1043459  }
 0x19b   :  { %v1261_v25 = vadd.f32 %v1260_v22, %v1200_v23  ;;  %v2983_v2 = vsel %vm1447_vm7, %v1347_v10, %v1332_v18  ;;  %v1231_v32 = vadd.f32 %v1230_v35, %v1229_v26 }
 0x19c   :  { %v1112_v4 = vpop.f32.mrf.mxu1 }
 0x19d   :  { %v1262_v31 = vrot.slane %v1261_v25, 4  ;;  %v1281_v52 = vadd.f32 %v2948_v41, %v1231_v32  ;;  %v1186_v53 = vmul.f32 %v2926_v36, %v1112_v4 }
 0x19f   :  { %v1263_v44 = vadd.f32 %v1262_v31, %v1261_v25  ;;  %v1548_v29 = vmul.f32 -1.442695, %v1281_v52  ;;  %v1232_v37 = vadd.f32 %v1186_v53, %v1185_v56 }
 0x1a0   :  { %v1157_v13 = vpop.f32.mrf.mxu3 }
 0x1a1   :  { %v1264_v48 = vrot.slane %v1263_v44, 2  ;;  %1796 = vpow2.f32 %v1548_v29  ;;  %v1201_v15 = vmul.f32 %v2924_v42, %v1157_v13 }
 0x1a2   :  { %1798 = vpow2.f32 %v1550_v16 }
 0x1a3   :  { %v1265_v58 = vadd.f32 %v1264_v48, %v1263_v44  ;;  %1800 = vpow2.f32 %v1551_v38 }
 0x1a4   :  { %v1115_v47 = vpop.f32.mrf.mxu1 }
 0x1a5   :  { %v1187_v63 = vmul.f32 %v2930_v11, %v1115_v47  ;;  %v1266_v1 = vrot.slane %v1265_v58, 1 }
 0x1a7   :  { %v1233_v5 = vadd.f32 %v1232_v37, %v1187_v63  ;;  %v1267_v7 = vadd.f32 %v1266_v1, %v1265_v58  ;;  %v1797_v55 = vpop.eup %1796 }
 0x1a8   :  { %v1160_v54 = vpop.f32.mrf.mxu3  ;;  %v1799_v45 = vpop.eup %1798  ;;  %v2996_v33 = vadd.f32 1.0, %v1797_v55 }
 0x1a9   :  { %v1202_v3 = vmul.f32 %v2926_v36, %v1160_v54  ;;  %v1285_v40 = vadd.f32 %v2948_v41, %v1267_v7  ;;  %v1801_v43 = vpop.eup %1800  ;;  %v2998_v34 = vadd.f32 1.0, %v1799_v45 }
 0x1aa   :  { %v3001_v23 = vadd.f32 1.0, %v1801_v43  ;;  %1802 = vrcp.f32 %v2996_v33  ;;  %v1360_v16 = vand.u32 2147483648, %v2996_v33  ;;  %vm1354_vm12 = vweird.f32 %v2996_v33 }
 0x1ab   :  { %v1268_v14 = vadd.f32 %v1202_v3, %v1201_v15  ;;  %v1552_v21 = vmul.f32 -1.442695, %v1285_v40  ;;  %v1390_v60 = vand.u32 2147483648, %v2998_v34  ;;  %v1388_v54 = vand.u32 2147483647, %v2998_v34 }
 0x1ac   :  { %v1118_v6 = vpop.f32.mrf.mxu1  ;;  %vm1384_vm10 = vweird.f32 %v2998_v34  ;;  %vm1399_vm15 = vweird.f32 %v3001_v23  ;;  %v1361_v15 = vor.u32 1.1754944e-38, %v1360_v16 }
 0x1ad   :  { %v1188_v8 = vmul.f32 %v2935_v62, %v1118_v6  ;;  %1804 = vpow2.f32 %v1552_v21  ;;  %v1391_v1 = vor.u32 1.1754944e-38, %v1390_v60  ;;  %v1358_v6 = vand.u32 2147483647, %v2996_v33 }
 0x1ae   :  { %1806 = vrcp.f32 %v2998_v34  ;;  %vm3038_vm13 = vcmp.eq.f32.partialorder %v1388_v54, 8.507059e+37 }
 0x1af   :  { %v1234_v57 = vadd.f32 %v1233_v5, %v1188_v8  ;;  %1808 = vrcp.f32 %v3001_v23  ;;  %vm1359_vm2 = vcmp.eq.f32.partialorder %v1358_v6, 8.507059e+37 }
 0x1b0   :  { %v1163_v28 = vpop.f32.mrf.mxu3  ;;  %v3007_v10 = vpop.eup %1802 }
 0x1b1   :  { %v1235_v61 = vrot.slane %v1234_v57, 4  ;;  %v1203_v17 = vmul.f32 %v2930_v11, %v1163_v28  ;;  %v1350_v31 = vmul.f32 %v3007_v10, %v2996_v33  ;;  %vm1355_vm9 = vweird.f32 %v3007_v10 }
 0x1b2   :  { %vm3044_vm14 = vmor %vm1354_vm12, %vm1355_vm9  ;;  %v1403_v33 = vand.u32 2147483647, %v3001_v23 }
 0x1b3   :  { %v1236_v30 = vadd.f32 %v1235_v61, %v1234_v57  ;;  %v1269_v12 = vadd.f32 %v1268_v14, %v1203_v17  ;;  %v1805_v25 = vpop.eup %1804  ;;  %v1351_v32 = vsub.f32 1.0, %v1350_v31  ;;  %v1405_v61 = vand.u32 2147483648, %v3001_v23 }
 0x1b4   :  { %v3009_v27 = vpop.eup %1806  ;;  %v3015_v35 = vadd.f32 1.0, %v1805_v25  ;;  %vm1404_vm12 = vcmp.eq.f32.partialorder %v1403_v33, 8.507059e+37 }
 0x1b5   :  { %v1237_v0 = vrot.slane %v1236_v30, 2  ;;  %v3013_v9 = vpop.eup %1808  ;;  %v1380_v44 = vmul.f32 %v3009_v27, %v2998_v34  ;;  %v1352_v56 = vmul.f32 %v3007_v10, %v1351_v32  ;;  %vm1385_vm11 = vweird.f32 %v3009_v27 }
 0x1b6   :  { %v1395_v48 = vmul.f32 %v3013_v9, %v3001_v23  ;;  %vm1400_vm0 = vweird.f32 %v3013_v9  ;;  %vm3062_vm3 = vmor %vm1384_vm10, %vm1385_vm11  ;;  %vm1453_vm10 = vcmask 1044484   ;;  %vm1455_vm11 = vcmask 1045509  }
 0x1b7   :  { %v1238_v50 = vadd.f32 %v1237_v0, %v1236_v30  ;;  %v1381_v51 = vsub.f32 1.0, %v1380_v44  ;;  %v1353_v29 = vadd.f32 %v3007_v10, %v1352_v56  ;;  %vm3071_vm5 = vmor %vm1399_vm15, %vm1400_vm0  ;;  %vm1414_vm15 = vweird.f32 %v3015_v35 }
 0x1b8   :  { %v1166_v20 = vpop.f32.mrf.mxu3  ;;  %v1396_v53 = vsub.f32 1.0, %v1395_v48 }
 0x1b9   :  { %v1239_v36 = vrot.slane %v1238_v50, 1  ;;  %v1204_v22 = vmul.f32 %v2935_v62, %v1166_v20  ;;  %v1382_v58 = vmul.f32 %v3009_v27, %v1381_v51  ;;  %v1357_v30 = vsel %vm3044_vm14, %v3007_v10, %v1353_v29 }
 0x1bb   :  { %v1240_v42 = vadd.f32 %v1239_v36, %v1238_v50  ;;  %v1270_v11 = vadd.f32 %v1269_v12, %v1204_v22  ;;  %v1383_v5 = vadd.f32 %v3009_v27, %v1382_v58  ;;  %v1362_v50 = vsel %vm1359_vm2, %v1361_v15, %v1357_v30 }
 0x1bc   :  { %v1406_v36 = vor.u32 1.1754944e-38, %v1405_v61  ;;  %vm1457_vm2 = vcmask 1046534  }
 0x1bd   :  { %v1282_v24 = vadd.f32 %v2948_v41, %v1240_v42  ;;  %v1271_v39 = vrot.slane %v1270_v11, 4  ;;  %v1387_v34 = vsel %vm3062_vm3, %v3009_v27, %v1383_v5 }
 0x1bf   :  { %v1549_v26 = vmul.f32 -1.442695, %v1282_v24  ;;  %v1272_v18 = vadd.f32 %v1271_v39, %v1270_v11  ;;  %v1450_v11 = vsel %vm1449_vm6, %v1362_v50, %v2983_v2  ;;  %v1392_v24 = vsel %vm3038_vm13, %v1391_v1, %v1387_v34 }
 0x1c0   :  { %v1418_v2 = vand.u32 2147483647, %v3015_v35 }
 0x1c1   :  { %1810 = vpow2.f32 %v1549_v26  ;;  %v1273_v62 = vrot.slane %v1272_v18, 2 }
 0x1c2   :  { %1812 = vrcp.f32 %v3015_v35  ;;  %vm1419_vm3 = vcmp.eq.f32.partialorder %v1418_v2, 8.507059e+37 }
 0x1c3   :  { %v1274_v4 = vadd.f32 %v1273_v62, %v1272_v18 }
 0x1c5   :  { %v1275_v19 = vrot.slane %v1274_v4, 1 }
 0x1c7   :  { %v1811_v13 = vpop.eup %1810  ;;  %v1276_v46 = vadd.f32 %v1275_v19, %v1274_v4  ;;  %v1420_v4 = vand.u32 2147483648, %v3015_v35 }
 0x1c8   :  { %v1314_v49 = vadd.f32 1.0, %v1811_v13  ;;  %v3027_v63 = vpop.eup %1812 }
 0x1c9   :  { %v1286_v47 = vadd.f32 %v2948_v41, %v1276_v46  ;;  %v1397_v41 = vmul.f32 %v3013_v9, %v1396_v53  ;;  %v1410_v38 = vmul.f32 %v3027_v63, %v3015_v35  ;;  %vm1415_vm14 = vweird.f32 %v3027_v63 }
 0x1ca   :  { %1814 = vrcp.f32 %v1314_v49  ;;  %v1375_v55 = vand.u32 2147483648, %v1314_v49  ;;  %v1373_v17 = vand.u32 2147483647, %v1314_v49  ;;  %vm1369_vm4 = vweird.f32 %v1314_v49  ;;  %vm3092_vm13 = vmor %vm1414_vm15, %vm1415_vm14 }
 0x1cb   :  { %v1553_v52 = vmul.f32 -1.442695, %v1286_v47  ;;  %v1398_v40 = vadd.f32 %v3013_v9, %v1397_v41  ;;  %v1411_v14 = vsub.f32 1.0, %v1410_v38  ;;  %v1421_v32 = vor.u32 1.1754944e-38, %v1420_v4 }
 0x1cc   :  { %v1376_v20 = vor.u32 1.1754944e-38, %v1375_v55  ;;  %vm1374_vm9 = vcmp.eq.f32.partialorder %v1373_v17, 8.507059e+37 }
 0x1cd   :  { %1816 = vpow2.f32 %v1553_v52  ;;  %v1402_v22 = vsel %vm3071_vm5, %v3013_v9, %v1398_v40  ;;  %v1412_v42 = vmul.f32 %v3027_v63, %v1411_v14  ;;  %vm1459_vm5 = vcmask 1047559  }
 0x1ce   :  { %v1407_v18 = vsel %vm1404_vm12, %v1406_v36, %v1402_v22 }
 0x1cf   :  { %v1413_v27 = vadd.f32 %v3027_v63, %v1412_v42 }
 0x1d0   :  { %v1815_v59 = vpop.eup %1814 }
 0x1d1   :  { %v1365_v37 = vmul.f32 %v1815_v59, %v1314_v49  ;;  %vm1370_vm1 = vweird.f32 %v1815_v59  ;;  %v1417_v46 = vsel %vm3092_vm13, %v3027_v63, %v1413_v27 }
 0x1d2   :  { %vm1371_vm7 = vmor %vm1369_vm4, %vm1370_vm1  ;;  %v1422_v48 = vsel %vm1419_vm3, %v1421_v32, %v1417_v46 }
 0x1d3   :  { %v1817_v57 = vpop.eup %1816  ;;  %v1366_v7 = vsub.f32 1.0, %v1365_v37 }
 0x1d4   :  { %v3051_v3 = vadd.f32 1.0, %v1817_v57 }
 0x1d5   :  { %v1367_v0 = vmul.f32 %v1815_v59, %v1366_v7 }
 0x1d6   :  { %1818 = vrcp.f32 %v3051_v3  ;;  %v1435_v9 = vand.u32 2147483648, %v3051_v3  ;;  %v1433_v13 = vand.u32 2147483647, %v3051_v3  ;;  %vm1429_vm1 = vweird.f32 %v3051_v3 }
 0x1d7   :  { %v1368_v43 = vadd.f32 %v1815_v59, %v1367_v0 }
 0x1d8   :  { %v1436_v35 = vor.u32 1.1754944e-38, %v1435_v9  ;;  %vm1434_vm6 = vcmp.eq.f32.partialorder %v1433_v13, 8.507059e+37 }
 0x1d9   :  { %v1372_v12 = vsel %vm1371_vm7, %v1815_v59, %v1368_v43 }
 0x1da   :  { %v1377_v23 = vsel %vm1374_vm9, %v1376_v20, %v1372_v12 }
 0x1db   :  { %v1452_v39 = vsel %vm1451_vm8, %v1377_v23, %v1450_v11 }
 0x1dc   :  { %v1819_v26 = vpop.eup %1818  ;;  %v1454_v10 = vsel %vm1453_vm10, %v1392_v24, %v1452_v39 }
 0x1dd   :  { %v1425_v62 = vmul.f32 %v1819_v26, %v3051_v3  ;;  %v1456_v25 = vsel %vm1455_vm11, %v1407_v18, %v1454_v10  ;;  %vm1430_vm0 = vweird.f32 %v1819_v26 }
 0x1de   :  { %vm1431_vm4 = vmor %vm1429_vm1, %vm1430_vm0  ;;  %v1458_v52 = vsel %vm1457_vm2, %v1422_v48, %v1456_v25 }
 0x1df   :  { %v1426_v31 = vsub.f32 1.0, %v1425_v62 }
 0x1e1   :  { %v1427_v44 = vmul.f32 %v1819_v26, %v1426_v31 }
 0x1e3   :  { %v1428_v49 = vadd.f32 %v1819_v26, %v1427_v44 }
 0x1e5   :  { %v1432_v47 = vsel %vm1431_vm4, %v1819_v26, %v1428_v49 }
 0x1e6   :  { %v1437_v51 = vsel %vm1434_vm6, %v1436_v35, %v1432_v47 }
 0x1e7   :  { %v1460_v56 = vsel %vm1459_vm5, %v1437_v51, %v1458_v52 }
 0x1e8   :  { %1462 = vst [vmem:[#allocation12] sm:$0xff] %v1460_v56 }
 0x1e9   :  { %1473 = dma.vmem_to_hbm [thread:$0]  %s1469_s23, 128, %s1471_s26, [#allocation5]  }
 0x1ea   :  { %1970 = dma.done.wait [#allocation5], 128  }
 0x1eb   :  { %1971 = vsyncadd [#allocation5], 4294967168 }
 0x1ec   :  { %1478 = vsyncpa [#allocation4], 1 }
 0x1ed   :  { %1479 = vsyncpa [#allocation7], 1 }
 0x1ee   :  { %1480 = vsyncpa [#allocation10], 1 }
 0x1ef   :  { %1481 = vsyncpa [#allocation5], 1 }

</bundles_post_ra>
